<compile_context>
chip_gen: v7x
topology: tpu7x:2x2x1
jax: 0.10.0
libtpu: 0.0.40
codegen_flags: <defaults>
</compile_context>

<pallas_src>
import math

import jax
import jax.numpy as jnp
from jax import lax
from jax.experimental import pallas as pl
from jax.experimental.pallas import tpu as pltpu

n_embds = 32      # embedding dim C
head_size = 4     # number of heads (the PyTorch code's naming); per-head dim = C // head_size
dropout = 0.1     # identity at inference

# ---- parameter-stack layout -------------------------------------------------
# weight stack  W[10, C, C]   stored as (in, out) so the kernel computes x @ W
W_SA_Q, W_SA_K, W_SA_V, W_SA_P = 0, 1, 2, 3
W_CA_Q, W_CA_K, W_CA_V, W_CA_P = 4, 5, 6, 7
W_FF_1, W_FF_2 = 8, 9
# bias / LayerNorm stack  V[16, C]
B_LN0_G, B_LN0_B, B_LN1_G, B_LN1_B, B_LN2_G, B_LN2_B = 0, 1, 2, 3, 4, 5
B_SA_Q, B_SA_K, B_SA_V, B_SA_P = 6, 7, 8, 9
B_CA_Q, B_CA_K, B_CA_V, B_CA_P = 10, 11, 12, 13
B_FF_1, B_FF_2 = 14, 15


def decoder_block_kernel(x_ref, enc_ref, mask_ref, w_ref, v_ref, o_ref):
    """One program = one batch element. All shapes are (T, C)-sized, fit VMEM."""
    C = x_ref.shape[-1]
    H = head_size
    D = C // H
    scale = 1.0 / math.sqrt(D)

    x = x_ref[0]            # (T, C)
    enc = enc_ref[0]        # (Te, C)
    mask = mask_ref[...]    # (T, T); 1.0 = keep, 0.0 = masked
    vecs = v_ref[...]       # (16, C) biases + LN params, loaded once (hoisted)

    def row(i):             # (1, C) row of the bias/LN stack (broadcasts over T)
        return vecs[i:i + 1, :]

    def layer_norm(t, gi, bi):
        mu = jnp.mean(t, axis=-1, keepdims=True)
        var = jnp.mean((t - mu) * (t - mu), axis=-1, keepdims=True)
        return (t - mu) * lax.rsqrt(var + 1e-5) * row(gi) + row(bi)

    def linear(t, wi, bi):
        return jnp.dot(t, w_ref[wi], preferred_element_type=jnp.float32) + row(bi)

    def attention(q_in, kv_in, w0, b0, use_mask):
        # Full-width QKV projections on the MXU.
        q = linear(q_in, w0 + 0, b0 + 0)    # (Tq, C)
        k = linear(kv_in, w0 + 1, b0 + 1)   # (Tk, C)
        v = linear(kv_in, w0 + 2, b0 + 2)   # (Tk, C)
        wp = w_ref[w0 + 3]                  # (C, C) output projection
        # Accumulate the output projection per head (avoids a lane concat):
        #   concat_h(y_h) @ Wp  ==  sum_h  y_h @ Wp[h*D:(h+1)*D, :]
        out = row(b0 + 3)                   # (1, C) bias, broadcasts to (Tq, C)
        for h in range(H):                  # static unroll, H = 4
            lo, hi = h * D, (h + 1) * D
            qh, kh, vh = q[:, lo:hi], k[:, lo:hi], v[:, lo:hi]      # (T*, D)
            # scores = qh @ kh.T  (contract last dims; no explicit transpose)
            s = lax.dot_general(qh, kh, (((1,), (1,)), ((), ())),
                                preferred_element_type=jnp.float32) * scale
            if use_mask:
                s = jnp.where(mask == 0.0, -1e30, s)
            s = s - jnp.max(s, axis=-1, keepdims=True)
            e = jnp.exp(s)
            p = e / jnp.sum(e, axis=-1, keepdims=True)              # softmax
            yh = jnp.dot(p, vh, preferred_element_type=jnp.float32)  # (Tq, D)
            out = out + jnp.dot(yh, wp[lo:hi, :],
                                preferred_element_type=jnp.float32)
        return out                           # (Tq, C); dropout = identity

    # --- DecoderBlock.forward (eval mode) ---
    h = layer_norm(x, B_LN0_G, B_LN0_B)
    h = h + attention(h, h, W_SA_Q, B_SA_Q, use_mask=True)     # self-attention
    h = layer_norm(h, B_LN1_G, B_LN1_B)
    h = h + attention(h, enc, W_CA_Q, B_CA_Q, use_mask=False)  # cross-attention
    h = layer_norm(h, B_LN2_G, B_LN2_B)
    ff = jnp.maximum(linear(h, W_FF_1, B_FF_1), 0.0)            # Linear -> ReLU
    h = h + linear(ff, W_FF_2, B_FF_2)                          # Linear (+resid)
    # final nn.Dropout: identity at inference
    o_ref[0] = h.astype(o_ref.dtype)


def decoder_block(x, enc, mask, w_stack, v_stack):
    """x: (B, T, C), enc: (B, Te, C), mask: (T, T) with 1=keep / 0=mask."""
    B, T, C = x.shape
    _, Te, _ = enc.shape
    nw = w_stack.shape[0]
    nv = v_stack.shape[0]
    return pl.pallas_call(
        decoder_block_kernel,
        out_shape=jax.ShapeDtypeStruct((B, T, C), x.dtype),
        grid_spec=pl.GridSpec(
            grid=(B,),
            in_specs=[
                pl.BlockSpec((1, T, C), lambda b: (b, 0, 0)),     # x (per batch)
                pl.BlockSpec((1, Te, C), lambda b: (b, 0, 0)),    # enc (per batch)
                pl.BlockSpec((T, T), lambda b: (0, 0)),           # mask (shared)
                pl.BlockSpec((nw, C, C), lambda b: (0, 0, 0)),    # weights (resident)
                pl.BlockSpec((nv, C), lambda b: (0, 0)),          # biases/LN (resident)
            ],
            out_specs=pl.BlockSpec((1, T, C), lambda b: (b, 0, 0)),
        ),
        compiler_params=pltpu.CompilerParams(
            dimension_semantics=("parallel",)),   # batch axis -> both TCs on v7x
    )(x, enc, mask, w_stack, v_stack)


def init_params(key, c):
    """Mirror PyTorch defaults.

    nn.Linear: W, b ~ U(-1/sqrt(in), 1/sqrt(in)); weights stored transposed
    as (in, out) so the kernel computes x @ W.  nn.LayerNorm: gamma=1, beta=0.
    """
    bound = 1.0 / math.sqrt(c)
    kw, kb = jax.random.split(key)
    w_stack = jax.random.uniform(kw, (10, c, c), jnp.float32, -bound, bound)
    v_stack = jnp.zeros((16, c), jnp.float32)
    v_stack = v_stack.at[B_LN0_G].set(1.0)
    v_stack = v_stack.at[B_LN1_G].set(1.0)
    v_stack = v_stack.at[B_LN2_G].set(1.0)
    biases = jax.random.uniform(kb, (10, c), jnp.float32, -bound, bound)
    v_stack = v_stack.at[B_SA_Q:B_FF_2 + 1].set(biases)
    return w_stack, v_stack


def reference_decoder_block(x, enc, mask, w_stack, v_stack):
    """Pure-JAX reference mirroring the PyTorch module (eval mode)."""
    C = x.shape[-1]
    H = head_size
    D = C // H

    def ln(t, gi, bi):
        mu = jnp.mean(t, axis=-1, keepdims=True)
        var = jnp.mean((t - mu) ** 2, axis=-1, keepdims=True)
        return (t - mu) / jnp.sqrt(var + 1e-5) * v_stack[gi] + v_stack[bi]

    def lin(t, wi, bi):
        return t @ w_stack[wi] + v_stack[bi]

    def attn(q_in, kv_in, w0, b0, m):
        B, Tq, _ = q_in.shape
        Tk = kv_in.shape[1]
        q = lin(q_in, w0 + 0, b0 + 0).reshape(B, Tq, H, D).transpose(0, 2, 1, 3)
        k = lin(kv_in, w0 + 1, b0 + 1).reshape(B, Tk, H, D).transpose(0, 2, 1, 3)
        v = lin(kv_in, w0 + 2, b0 + 2).reshape(B, Tk, H, D).transpose(0, 2, 1, 3)
        s = jnp.einsum('bhqd,bhkd->bhqk', q, k) * (1.0 / math.sqrt(D))
        if m is not None:
            s = jnp.where(m == 0.0, -jnp.inf, s)
        p = jax.nn.softmax(s, axis=-1)
        y = jnp.einsum('bhqk,bhkd->bhqd', p, v).transpose(0, 2, 1, 3).reshape(B, Tq, C)
        return lin(y, w0 + 3, b0 + 3)

    h = ln(x, B_LN0_G, B_LN0_B)
    h = h + attn(h, h, W_SA_Q, B_SA_Q, mask)
    h = ln(h, B_LN1_G, B_LN1_B)
    h = h + attn(h, enc, W_CA_Q, B_CA_Q, None)
    h = ln(h, B_LN2_G, B_LN2_B)
    ff = jnp.maximum(lin(h, W_FF_1, B_FF_1), 0.0)
    h = h + lin(ff, W_FF_2, B_FF_2)
    return h


if __name__ == "__main__":
    key = jax.random.PRNGKey(0)
    kx, ke, kp = jax.random.split(key, 3)

    B, T, Te, C = 2, 8, 8, n_embds
    x = jax.random.normal(kx, (B, T, C), jnp.float32)
    enc = jax.random.normal(ke, (B, Te, C), jnp.float32)
    mask = jnp.tril(jnp.ones((T, T), jnp.float32))   # causal self-attention mask

    w_stack, v_stack = init_params(kp, C)

    out = decoder_block(x, enc, mask, w_stack, v_stack)
    out = jax.block_until_ready(out)

    ref = reference_decoder_block(x, enc, mask, w_stack, v_stack)
    assert out.shape == (B, T, C)
    assert jnp.allclose(out, ref, atol=1e-4, rtol=1e-4), \
        float(jnp.max(jnp.abs(out - ref)))

    print("KERNEL_OK")
</pallas_src>

<mosaic_0001>
module attributes {stable_mosaic.version = 11 : i64} {
  func.func @decoder_block_kernel(%arg0: i32, %arg1: memref<1x8x32xf32, #tpu.memory_space<vmem>>, %arg2: memref<1x8x32xf32, #tpu.memory_space<vmem>>, %arg3: memref<8x8xf32, #tpu.memory_space<vmem>>, %arg4: memref<10x32x32xf32, #tpu.memory_space<vmem>>, %arg5: memref<16x32xf32, #tpu.memory_space<vmem>>, %arg6: memref<1x8x32xf32, #tpu.memory_space<vmem>>) attributes {dimension_semantics = [#tpu.dimension_semantics<parallel>], iteration_bounds = array<i64: 2>, scalar_prefetch = 0 : i64, scratch_operands = 0 : i64, tpu.core_type = #tpu.core_type<tc>, window_params = [{transform_indices = @transform_0, window_bounds = array<i64: 1, 8, 32>}, {transform_indices = @transform_1, window_bounds = array<i64: 1, 8, 32>}, {pipeline_mode = #tpu.pipeline_mode<synchronous>, transform_indices = @transform_2, window_bounds = array<i64: 8, 8>}, {pipeline_mode = #tpu.pipeline_mode<synchronous>, transform_indices = @transform_3, window_bounds = array<i64: 10, 32, 32>}, {pipeline_mode = #tpu.pipeline_mode<synchronous>, transform_indices = @transform_4, window_bounds = array<i64: 16, 32>}, {transform_indices = @transform_5, window_bounds = array<i64: 1, 8, 32>}]} {
    %c0 = arith.constant 0 : index
    %c0_0 = arith.constant 0 : index
    %c0_1 = arith.constant 0 : index
    %0 = vector.load %arg1[%c0, %c0_0, %c0_1] : memref<1x8x32xf32, #tpu.memory_space<vmem>>, vector<1x8x32xf32>
    %1 = vector.shape_cast %0 : vector<1x8x32xf32> to vector<8x32xf32>
    %c0_2 = arith.constant 0 : index
    %c0_3 = arith.constant 0 : index
    %c0_4 = arith.constant 0 : index
    %2 = vector.load %arg2[%c0_2, %c0_3, %c0_4] : memref<1x8x32xf32, #tpu.memory_space<vmem>>, vector<1x8x32xf32>
    %3 = vector.shape_cast %2 : vector<1x8x32xf32> to vector<8x32xf32>
    %c0_5 = arith.constant 0 : index
    %c0_6 = arith.constant 0 : index
    %4 = vector.load %arg3[%c0_5, %c0_6] : memref<8x8xf32, #tpu.memory_space<vmem>>, vector<8x8xf32>
    %c0_7 = arith.constant 0 : index
    %c0_8 = arith.constant 0 : index
    %5 = vector.load %arg5[%c0_7, %c0_8] : memref<16x32xf32, #tpu.memory_space<vmem>>, vector<16x32xf32>
    %cst = arith.constant dense<0.000000e+00> : vector<8xf32>
    %6 = vector.multi_reduction <add>, %1, %cst [1] : vector<8x32xf32> to vector<8xf32>
    %7 = vector.shape_cast %6 : vector<8xf32> to vector<8x1xf32>
    %cst_9 = arith.constant 3.200000e+01 : f32
    %8 = vector.broadcast %cst_9 : f32 to vector<8x1xf32>
    %9 = arith.divf %7, %8 : vector<8x1xf32>
    %10 = vector.broadcast %9 : vector<8x1xf32> to vector<8x32xf32>
    %11 = arith.subf %1, %10 : vector<8x32xf32>
    %12 = vector.broadcast %9 : vector<8x1xf32> to vector<8x32xf32>
    %13 = arith.subf %1, %12 : vector<8x32xf32>
    %14 = arith.mulf %11, %13 : vector<8x32xf32>
    %cst_10 = arith.constant dense<0.000000e+00> : vector<8xf32>
    %15 = vector.multi_reduction <add>, %14, %cst_10 [1] : vector<8x32xf32> to vector<8xf32>
    %16 = vector.shape_cast %15 : vector<8xf32> to vector<8x1xf32>
    %cst_11 = arith.constant 3.200000e+01 : f32
    %17 = vector.broadcast %cst_11 : f32 to vector<8x1xf32>
    %18 = arith.divf %16, %17 : vector<8x1xf32>
    %19 = vector.broadcast %9 : vector<8x1xf32> to vector<8x32xf32>
    %20 = arith.subf %1, %19 : vector<8x32xf32>
    %cst_12 = arith.constant 9.99999974E-6 : f32
    %21 = vector.broadcast %cst_12 : f32 to vector<8x1xf32>
    %22 = arith.addf %18, %21 : vector<8x1xf32>
    %23 = math.rsqrt %22 : vector<8x1xf32>
    %24 = vector.broadcast %23 : vector<8x1xf32> to vector<8x32xf32>
    %25 = arith.mulf %20, %24 : vector<8x32xf32>
    %26 = vector.extract_strided_slice %5 {offsets = [0, 0], sizes = [1, 32], strides = [1, 1]} : vector<16x32xf32> to vector<1x32xf32>
    %27 = vector.broadcast %26 : vector<1x32xf32> to vector<8x32xf32>
    %28 = arith.mulf %25, %27 : vector<8x32xf32>
    %29 = vector.extract_strided_slice %5 {offsets = [1, 0], sizes = [1, 32], strides = [1, 1]} : vector<16x32xf32> to vector<1x32xf32>
    %30 = vector.broadcast %29 : vector<1x32xf32> to vector<8x32xf32>
    %31 = arith.addf %28, %30 : vector<8x32xf32>
    %c0_13 = arith.constant 0 : index
    %c0_14 = arith.constant 0 : index
    %c0_15 = arith.constant 0 : index
    %32 = vector.load %arg4[%c0_13, %c0_14, %c0_15] : memref<10x32x32xf32, #tpu.memory_space<vmem>>, vector<1x32x32xf32>
    %33 = vector.shape_cast %32 : vector<1x32x32xf32> to vector<32x32xf32>
    %cst_16 = arith.constant dense<0.000000e+00> : vector<8x32xf32>
    %34 = tpu.matmul %31, %33, %cst_16 {dimension_numbers = #tpu.dot_dimension_numbers<[1], [0], [0], [1], [0, 0, 1, 1], [], []>} : vector<8x32xf32>, vector<32x32xf32>, vector<8x32xf32> -> vector<8x32xf32>
    %35 = vector.extract_strided_slice %5 {offsets = [6, 0], sizes = [1, 32], strides = [1, 1]} : vector<16x32xf32> to vector<1x32xf32>
    %36 = vector.broadcast %35 : vector<1x32xf32> to vector<8x32xf32>
    %37 = arith.addf %34, %36 : vector<8x32xf32>
    %c1 = arith.constant 1 : index
    %c0_17 = arith.constant 0 : index
    %c0_18 = arith.constant 0 : index
    %38 = vector.load %arg4[%c1, %c0_17, %c0_18] : memref<10x32x32xf32, #tpu.memory_space<vmem>>, vector<1x32x32xf32>
    %39 = vector.shape_cast %38 : vector<1x32x32xf32> to vector<32x32xf32>
    %cst_19 = arith.constant dense<0.000000e+00> : vector<8x32xf32>
    %40 = tpu.matmul %31, %39, %cst_19 {dimension_numbers = #tpu.dot_dimension_numbers<[1], [0], [0], [1], [0, 0, 1, 1], [], []>} : vector<8x32xf32>, vector<32x32xf32>, vector<8x32xf32> -> vector<8x32xf32>
    %41 = vector.extract_strided_slice %5 {offsets = [7, 0], sizes = [1, 32], strides = [1, 1]} : vector<16x32xf32> to vector<1x32xf32>
    %42 = vector.broadcast %41 : vector<1x32xf32> to vector<8x32xf32>
    %43 = arith.addf %40, %42 : vector<8x32xf32>
    %c2 = arith.constant 2 : index
    %c0_20 = arith.constant 0 : index
    %c0_21 = arith.constant 0 : index
    %44 = vector.load %arg4[%c2, %c0_20, %c0_21] : memref<10x32x32xf32, #tpu.memory_space<vmem>>, vector<1x32x32xf32>
    %45 = vector.shape_cast %44 : vector<1x32x32xf32> to vector<32x32xf32>
    %cst_22 = arith.constant dense<0.000000e+00> : vector<8x32xf32>
    %46 = tpu.matmul %31, %45, %cst_22 {dimension_numbers = #tpu.dot_dimension_numbers<[1], [0], [0], [1], [0, 0, 1, 1], [], []>} : vector<8x32xf32>, vector<32x32xf32>, vector<8x32xf32> -> vector<8x32xf32>
    %47 = vector.extract_strided_slice %5 {offsets = [8, 0], sizes = [1, 32], strides = [1, 1]} : vector<16x32xf32> to vector<1x32xf32>
    %48 = vector.broadcast %47 : vector<1x32xf32> to vector<8x32xf32>
    %49 = arith.addf %46, %48 : vector<8x32xf32>
    %c3 = arith.constant 3 : index
    %c0_23 = arith.constant 0 : index
    %c0_24 = arith.constant 0 : index
    %50 = vector.load %arg4[%c3, %c0_23, %c0_24] : memref<10x32x32xf32, #tpu.memory_space<vmem>>, vector<1x32x32xf32>
    %51 = vector.shape_cast %50 : vector<1x32x32xf32> to vector<32x32xf32>
    %52 = vector.extract_strided_slice %5 {offsets = [9, 0], sizes = [1, 32], strides = [1, 1]} : vector<16x32xf32> to vector<1x32xf32>
    %53 = vector.extract_strided_slice %37 {offsets = [0, 0], sizes = [8, 8], strides = [1, 1]} : vector<8x32xf32> to vector<8x8xf32>
    %54 = vector.extract_strided_slice %43 {offsets = [0, 0], sizes = [8, 8], strides = [1, 1]} : vector<8x32xf32> to vector<8x8xf32>
    %55 = vector.extract_strided_slice %49 {offsets = [0, 0], sizes = [8, 8], strides = [1, 1]} : vector<8x32xf32> to vector<8x8xf32>
    %cst_25 = arith.constant dense<0.000000e+00> : vector<8x8xf32>
    %56 = tpu.matmul %53, %54, %cst_25 {dimension_numbers = #tpu.dot_dimension_numbers<[1], [1], [0], [0], [0, 0, 1, 0], [], []>} : vector<8x8xf32>, vector<8x8xf32>, vector<8x8xf32> -> vector<8x8xf32>
    %cst_26 = arith.constant 0.353553385 : f32
    %57 = vector.broadcast %cst_26 : f32 to vector<8x8xf32>
    %58 = arith.mulf %56, %57 : vector<8x8xf32>
    %cst_27 = arith.constant 0.000000e+00 : f32
    %59 = vector.broadcast %cst_27 : f32 to vector<8x8xf32>
    %60 = arith.cmpf oeq, %4, %59 : vector<8x8xf32>
    %cst_28 = arith.constant -1.000000e+30 : f32
    %61 = vector.broadcast %cst_28 : f32 to vector<8x8xf32>
    %62 = arith.select %60, %61, %58 : vector<8x8xi1>, vector<8x8xf32>
    %cst_29 = arith.constant dense<0xFF800000> : vector<8xf32>
    %63 = vector.multi_reduction <maximumf>, %62, %cst_29 [1] : vector<8x8xf32> to vector<8xf32>
    %64 = vector.shape_cast %63 : vector<8xf32> to vector<8x1xf32>
    %65 = vector.broadcast %64 : vector<8x1xf32> to vector<8x8xf32>
    %66 = arith.subf %62, %65 : vector<8x8xf32>
    %67 = math.exp %66 : vector<8x8xf32>
    %cst_30 = arith.constant dense<0.000000e+00> : vector<8xf32>
    %68 = vector.multi_reduction <add>, %67, %cst_30 [1] : vector<8x8xf32> to vector<8xf32>
    %69 = vector.shape_cast %68 : vector<8xf32> to vector<8x1xf32>
    %70 = vector.broadcast %69 : vector<8x1xf32> to vector<8x8xf32>
    %71 = arith.divf %67, %70 : vector<8x8xf32>
    %cst_31 = arith.constant dense<0.000000e+00> : vector<8x8xf32>
    %72 = tpu.matmul %71, %55, %cst_31 {dimension_numbers = #tpu.dot_dimension_numbers<[1], [0], [0], [1], [0, 0, 1, 1], [], []>} : vector<8x8xf32>, vector<8x8xf32>, vector<8x8xf32> -> vector<8x8xf32>
    %73 = vector.extract_strided_slice %51 {offsets = [0, 0], sizes = [8, 32], strides = [1, 1]} : vector<32x32xf32> to vector<8x32xf32>
    %cst_32 = arith.constant dense<0.000000e+00> : vector<8x32xf32>
    %74 = tpu.matmul %72, %73, %cst_32 {dimension_numbers = #tpu.dot_dimension_numbers<[1], [0], [0], [1], [0, 0, 1, 1], [], []>} : vector<8x8xf32>, vector<8x32xf32>, vector<8x32xf32> -> vector<8x32xf32>
    %75 = vector.broadcast %52 : vector<1x32xf32> to vector<8x32xf32>
    %76 = arith.addf %75, %74 : vector<8x32xf32>
    %77 = vector.extract_strided_slice %37 {offsets = [0, 8], sizes = [8, 8], strides = [1, 1]} : vector<8x32xf32> to vector<8x8xf32>
    %78 = vector.extract_strided_slice %43 {offsets = [0, 8], sizes = [8, 8], strides = [1, 1]} : vector<8x32xf32> to vector<8x8xf32>
    %79 = vector.extract_strided_slice %49 {offsets = [0, 8], sizes = [8, 8], strides = [1, 1]} : vector<8x32xf32> to vector<8x8xf32>
    %cst_33 = arith.constant dense<0.000000e+00> : vector<8x8xf32>
    %80 = tpu.matmul %77, %78, %cst_33 {dimension_numbers = #tpu.dot_dimension_numbers<[1], [1], [0], [0], [0, 0, 1, 0], [], []>} : vector<8x8xf32>, vector<8x8xf32>, vector<8x8xf32> -> vector<8x8xf32>
    %cst_34 = arith.constant 0.353553385 : f32
    %81 = vector.broadcast %cst_34 : f32 to vector<8x8xf32>
    %82 = arith.mulf %80, %81 : vector<8x8xf32>
    %cst_35 = arith.constant 0.000000e+00 : f32
    %83 = vector.broadcast %cst_35 : f32 to vector<8x8xf32>
    %84 = arith.cmpf oeq, %4, %83 : vector<8x8xf32>
    %cst_36 = arith.constant -1.000000e+30 : f32
    %85 = vector.broadcast %cst_36 : f32 to vector<8x8xf32>
    %86 = arith.select %84, %85, %82 : vector<8x8xi1>, vector<8x8xf32>
    %cst_37 = arith.constant dense<0xFF800000> : vector<8xf32>
    %87 = vector.multi_reduction <maximumf>, %86, %cst_37 [1] : vector<8x8xf32> to vector<8xf32>
    %88 = vector.shape_cast %87 : vector<8xf32> to vector<8x1xf32>
    %89 = vector.broadcast %88 : vector<8x1xf32> to vector<8x8xf32>
    %90 = arith.subf %86, %89 : vector<8x8xf32>
    %91 = math.exp %90 : vector<8x8xf32>
    %cst_38 = arith.constant dense<0.000000e+00> : vector<8xf32>
    %92 = vector.multi_reduction <add>, %91, %cst_38 [1] : vector<8x8xf32> to vector<8xf32>
    %93 = vector.shape_cast %92 : vector<8xf32> to vector<8x1xf32>
    %94 = vector.broadcast %93 : vector<8x1xf32> to vector<8x8xf32>
    %95 = arith.divf %91, %94 : vector<8x8xf32>
    %cst_39 = arith.constant dense<0.000000e+00> : vector<8x8xf32>
    %96 = tpu.matmul %95, %79, %cst_39 {dimension_numbers = #tpu.dot_dimension_numbers<[1], [0], [0], [1], [0, 0, 1, 1], [], []>} : vector<8x8xf32>, vector<8x8xf32>, vector<8x8xf32> -> vector<8x8xf32>
    %97 = vector.extract_strided_slice %51 {offsets = [8, 0], sizes = [8, 32], strides = [1, 1]} : vector<32x32xf32> to vector<8x32xf32>
    %cst_40 = arith.constant dense<0.000000e+00> : vector<8x32xf32>
    %98 = tpu.matmul %96, %97, %cst_40 {dimension_numbers = #tpu.dot_dimension_numbers<[1], [0], [0], [1], [0, 0, 1, 1], [], []>} : vector<8x8xf32>, vector<8x32xf32>, vector<8x32xf32> -> vector<8x32xf32>
    %99 = arith.addf %76, %98 : vector<8x32xf32>
    %100 = vector.extract_strided_slice %37 {offsets = [0, 16], sizes = [8, 8], strides = [1, 1]} : vector<8x32xf32> to vector<8x8xf32>
    %101 = vector.extract_strided_slice %43 {offsets = [0, 16], sizes = [8, 8], strides = [1, 1]} : vector<8x32xf32> to vector<8x8xf32>
    %102 = vector.extract_strided_slice %49 {offsets = [0, 16], sizes = [8, 8], strides = [1, 1]} : vector<8x32xf32> to vector<8x8xf32>
    %cst_41 = arith.constant dense<0.000000e+00> : vector<8x8xf32>
    %103 = tpu.matmul %100, %101, %cst_41 {dimension_numbers = #tpu.dot_dimension_numbers<[1], [1], [0], [0], [0, 0, 1, 0], [], []>} : vector<8x8xf32>, vector<8x8xf32>, vector<8x8xf32> -> vector<8x8xf32>
    %cst_42 = arith.constant 0.353553385 : f32
    %104 = vector.broadcast %cst_42 : f32 to vector<8x8xf32>
    %105 = arith.mulf %103, %104 : vector<8x8xf32>
    %cst_43 = arith.constant 0.000000e+00 : f32
    %106 = vector.broadcast %cst_43 : f32 to vector<8x8xf32>
    %107 = arith.cmpf oeq, %4, %106 : vector<8x8xf32>
    %cst_44 = arith.constant -1.000000e+30 : f32
    %108 = vector.broadcast %cst_44 : f32 to vector<8x8xf32>
    %109 = arith.select %107, %108, %105 : vector<8x8xi1>, vector<8x8xf32>
    %cst_45 = arith.constant dense<0xFF800000> : vector<8xf32>
    %110 = vector.multi_reduction <maximumf>, %109, %cst_45 [1] : vector<8x8xf32> to vector<8xf32>
    %111 = vector.shape_cast %110 : vector<8xf32> to vector<8x1xf32>
    %112 = vector.broadcast %111 : vector<8x1xf32> to vector<8x8xf32>
    %113 = arith.subf %109, %112 : vector<8x8xf32>
    %114 = math.exp %113 : vector<8x8xf32>
    %cst_46 = arith.constant dense<0.000000e+00> : vector<8xf32>
    %115 = vector.multi_reduction <add>, %114, %cst_46 [1] : vector<8x8xf32> to vector<8xf32>
    %116 = vector.shape_cast %115 : vector<8xf32> to vector<8x1xf32>
    %117 = vector.broadcast %116 : vector<8x1xf32> to vector<8x8xf32>
    %118 = arith.divf %114, %117 : vector<8x8xf32>
    %cst_47 = arith.constant dense<0.000000e+00> : vector<8x8xf32>
    %119 = tpu.matmul %118, %102, %cst_47 {dimension_numbers = #tpu.dot_dimension_numbers<[1], [0], [0], [1], [0, 0, 1, 1], [], []>} : vector<8x8xf32>, vector<8x8xf32>, vector<8x8xf32> -> vector<8x8xf32>
    %120 = vector.extract_strided_slice %51 {offsets = [16, 0], sizes = [8, 32], strides = [1, 1]} : vector<32x32xf32> to vector<8x32xf32>
    %cst_48 = arith.constant dense<0.000000e+00> : vector<8x32xf32>
    %121 = tpu.matmul %119, %120, %cst_48 {dimension_numbers = #tpu.dot_dimension_numbers<[1], [0], [0], [1], [0, 0, 1, 1], [], []>} : vector<8x8xf32>, vector<8x32xf32>, vector<8x32xf32> -> vector<8x32xf32>
    %122 = arith.addf %99, %121 : vector<8x32xf32>
    %123 = vector.extract_strided_slice %37 {offsets = [0, 24], sizes = [8, 8], strides = [1, 1]} : vector<8x32xf32> to vector<8x8xf32>
    %124 = vector.extract_strided_slice %43 {offsets = [0, 24], sizes = [8, 8], strides = [1, 1]} : vector<8x32xf32> to vector<8x8xf32>
    %125 = vector.extract_strided_slice %49 {offsets = [0, 24], sizes = [8, 8], strides = [1, 1]} : vector<8x32xf32> to vector<8x8xf32>
    %cst_49 = arith.constant dense<0.000000e+00> : vector<8x8xf32>
    %126 = tpu.matmul %123, %124, %cst_49 {dimension_numbers = #tpu.dot_dimension_numbers<[1], [1], [0], [0], [0, 0, 1, 0], [], []>} : vector<8x8xf32>, vector<8x8xf32>, vector<8x8xf32> -> vector<8x8xf32>
    %cst_50 = arith.constant 0.353553385 : f32
    %127 = vector.broadcast %cst_50 : f32 to vector<8x8xf32>
    %128 = arith.mulf %126, %127 : vector<8x8xf32>
    %cst_51 = arith.constant 0.000000e+00 : f32
    %129 = vector.broadcast %cst_51 : f32 to vector<8x8xf32>
    %130 = arith.cmpf oeq, %4, %129 : vector<8x8xf32>
    %cst_52 = arith.constant -1.000000e+30 : f32
    %131 = vector.broadcast %cst_52 : f32 to vector<8x8xf32>
    %132 = arith.select %130, %131, %128 : vector<8x8xi1>, vector<8x8xf32>
    %cst_53 = arith.constant dense<0xFF800000> : vector<8xf32>
    %133 = vector.multi_reduction <maximumf>, %132, %cst_53 [1] : vector<8x8xf32> to vector<8xf32>
    %134 = vector.shape_cast %133 : vector<8xf32> to vector<8x1xf32>
    %135 = vector.broadcast %134 : vector<8x1xf32> to vector<8x8xf32>
    %136 = arith.subf %132, %135 : vector<8x8xf32>
    %137 = math.exp %136 : vector<8x8xf32>
    %cst_54 = arith.constant dense<0.000000e+00> : vector<8xf32>
    %138 = vector.multi_reduction <add>, %137, %cst_54 [1] : vector<8x8xf32> to vector<8xf32>
    %139 = vector.shape_cast %138 : vector<8xf32> to vector<8x1xf32>
    %140 = vector.broadcast %139 : vector<8x1xf32> to vector<8x8xf32>
    %141 = arith.divf %137, %140 : vector<8x8xf32>
    %cst_55 = arith.constant dense<0.000000e+00> : vector<8x8xf32>
    %142 = tpu.matmul %141, %125, %cst_55 {dimension_numbers = #tpu.dot_dimension_numbers<[1], [0], [0], [1], [0, 0, 1, 1], [], []>} : vector<8x8xf32>, vector<8x8xf32>, vector<8x8xf32> -> vector<8x8xf32>
    %143 = vector.extract_strided_slice %51 {offsets = [24, 0], sizes = [8, 32], strides = [1, 1]} : vector<32x32xf32> to vector<8x32xf32>
    %cst_56 = arith.constant dense<0.000000e+00> : vector<8x32xf32>
    %144 = tpu.matmul %142, %143, %cst_56 {dimension_numbers = #tpu.dot_dimension_numbers<[1], [0], [0], [1], [0, 0, 1, 1], [], []>} : vector<8x8xf32>, vector<8x32xf32>, vector<8x32xf32> -> vector<8x32xf32>
    %145 = arith.addf %122, %144 : vector<8x32xf32>
    %146 = arith.addf %31, %145 : vector<8x32xf32>
    %cst_57 = arith.constant dense<0.000000e+00> : vector<8xf32>
    %147 = vector.multi_reduction <add>, %146, %cst_57 [1] : vector<8x32xf32> to vector<8xf32>
    %148 = vector.shape_cast %147 : vector<8xf32> to vector<8x1xf32>
    %cst_58 = arith.constant 3.200000e+01 : f32
    %149 = vector.broadcast %cst_58 : f32 to vector<8x1xf32>
    %150 = arith.divf %148, %149 : vector<8x1xf32>
    %151 = vector.broadcast %150 : vector<8x1xf32> to vector<8x32xf32>
    %152 = arith.subf %146, %151 : vector<8x32xf32>
    %153 = vector.broadcast %150 : vector<8x1xf32> to vector<8x32xf32>
    %154 = arith.subf %146, %153 : vector<8x32xf32>
    %155 = arith.mulf %152, %154 : vector<8x32xf32>
    %cst_59 = arith.constant dense<0.000000e+00> : vector<8xf32>
    %156 = vector.multi_reduction <add>, %155, %cst_59 [1] : vector<8x32xf32> to vector<8xf32>
    %157 = vector.shape_cast %156 : vector<8xf32> to vector<8x1xf32>
    %cst_60 = arith.constant 3.200000e+01 : f32
    %158 = vector.broadcast %cst_60 : f32 to vector<8x1xf32>
    %159 = arith.divf %157, %158 : vector<8x1xf32>
    %160 = vector.broadcast %150 : vector<8x1xf32> to vector<8x32xf32>
    %161 = arith.subf %146, %160 : vector<8x32xf32>
    %cst_61 = arith.constant 9.99999974E-6 : f32
    %162 = vector.broadcast %cst_61 : f32 to vector<8x1xf32>
    %163 = arith.addf %159, %162 : vector<8x1xf32>
    %164 = math.rsqrt %163 : vector<8x1xf32>
    %165 = vector.broadcast %164 : vector<8x1xf32> to vector<8x32xf32>
    %166 = arith.mulf %161, %165 : vector<8x32xf32>
    %167 = vector.extract_strided_slice %5 {offsets = [2, 0], sizes = [1, 32], strides = [1, 1]} : vector<16x32xf32> to vector<1x32xf32>
    %168 = vector.broadcast %167 : vector<1x32xf32> to vector<8x32xf32>
    %169 = arith.mulf %166, %168 : vector<8x32xf32>
    %170 = vector.extract_strided_slice %5 {offsets = [3, 0], sizes = [1, 32], strides = [1, 1]} : vector<16x32xf32> to vector<1x32xf32>
    %171 = vector.broadcast %170 : vector<1x32xf32> to vector<8x32xf32>
    %172 = arith.addf %169, %171 : vector<8x32xf32>
    %c4 = arith.constant 4 : index
    %c0_62 = arith.constant 0 : index
    %c0_63 = arith.constant 0 : index
    %173 = vector.load %arg4[%c4, %c0_62, %c0_63] : memref<10x32x32xf32, #tpu.memory_space<vmem>>, vector<1x32x32xf32>
    %174 = vector.shape_cast %173 : vector<1x32x32xf32> to vector<32x32xf32>
    %cst_64 = arith.constant dense<0.000000e+00> : vector<8x32xf32>
    %175 = tpu.matmul %172, %174, %cst_64 {dimension_numbers = #tpu.dot_dimension_numbers<[1], [0], [0], [1], [0, 0, 1, 1], [], []>} : vector<8x32xf32>, vector<32x32xf32>, vector<8x32xf32> -> vector<8x32xf32>
    %176 = vector.extract_strided_slice %5 {offsets = [10, 0], sizes = [1, 32], strides = [1, 1]} : vector<16x32xf32> to vector<1x32xf32>
    %177 = vector.broadcast %176 : vector<1x32xf32> to vector<8x32xf32>
    %178 = arith.addf %175, %177 : vector<8x32xf32>
    %c5 = arith.constant 5 : index
    %c0_65 = arith.constant 0 : index
    %c0_66 = arith.constant 0 : index
    %179 = vector.load %arg4[%c5, %c0_65, %c0_66] : memref<10x32x32xf32, #tpu.memory_space<vmem>>, vector<1x32x32xf32>
    %180 = vector.shape_cast %179 : vector<1x32x32xf32> to vector<32x32xf32>
    %cst_67 = arith.constant dense<0.000000e+00> : vector<8x32xf32>
    %181 = tpu.matmul %3, %180, %cst_67 {dimension_numbers = #tpu.dot_dimension_numbers<[1], [0], [0], [1], [0, 0, 1, 1], [], []>} : vector<8x32xf32>, vector<32x32xf32>, vector<8x32xf32> -> vector<8x32xf32>
    %182 = vector.extract_strided_slice %5 {offsets = [11, 0], sizes = [1, 32], strides = [1, 1]} : vector<16x32xf32> to vector<1x32xf32>
    %183 = vector.broadcast %182 : vector<1x32xf32> to vector<8x32xf32>
    %184 = arith.addf %181, %183 : vector<8x32xf32>
    %c6 = arith.constant 6 : index
    %c0_68 = arith.constant 0 : index
    %c0_69 = arith.constant 0 : index
    %185 = vector.load %arg4[%c6, %c0_68, %c0_69] : memref<10x32x32xf32, #tpu.memory_space<vmem>>, vector<1x32x32xf32>
    %186 = vector.shape_cast %185 : vector<1x32x32xf32> to vector<32x32xf32>
    %cst_70 = arith.constant dense<0.000000e+00> : vector<8x32xf32>
    %187 = tpu.matmul %3, %186, %cst_70 {dimension_numbers = #tpu.dot_dimension_numbers<[1], [0], [0], [1], [0, 0, 1, 1], [], []>} : vector<8x32xf32>, vector<32x32xf32>, vector<8x32xf32> -> vector<8x32xf32>
    %188 = vector.extract_strided_slice %5 {offsets = [12, 0], sizes = [1, 32], strides = [1, 1]} : vector<16x32xf32> to vector<1x32xf32>
    %189 = vector.broadcast %188 : vector<1x32xf32> to vector<8x32xf32>
    %190 = arith.addf %187, %189 : vector<8x32xf32>
    %c7 = arith.constant 7 : index
    %c0_71 = arith.constant 0 : index
    %c0_72 = arith.constant 0 : index
    %191 = vector.load %arg4[%c7, %c0_71, %c0_72] : memref<10x32x32xf32, #tpu.memory_space<vmem>>, vector<1x32x32xf32>
    %192 = vector.shape_cast %191 : vector<1x32x32xf32> to vector<32x32xf32>
    %193 = vector.extract_strided_slice %5 {offsets = [13, 0], sizes = [1, 32], strides = [1, 1]} : vector<16x32xf32> to vector<1x32xf32>
    %194 = vector.extract_strided_slice %178 {offsets = [0, 0], sizes = [8, 8], strides = [1, 1]} : vector<8x32xf32> to vector<8x8xf32>
    %195 = vector.extract_strided_slice %184 {offsets = [0, 0], sizes = [8, 8], strides = [1, 1]} : vector<8x32xf32> to vector<8x8xf32>
    %196 = vector.extract_strided_slice %190 {offsets = [0, 0], sizes = [8, 8], strides = [1, 1]} : vector<8x32xf32> to vector<8x8xf32>
    %cst_73 = arith.constant dense<0.000000e+00> : vector<8x8xf32>
    %197 = tpu.matmul %194, %195, %cst_73 {dimension_numbers = #tpu.dot_dimension_numbers<[1], [1], [0], [0], [0, 0, 1, 0], [], []>} : vector<8x8xf32>, vector<8x8xf32>, vector<8x8xf32> -> vector<8x8xf32>
    %cst_74 = arith.constant 0.353553385 : f32
    %198 = vector.broadcast %cst_74 : f32 to vector<8x8xf32>
    %199 = arith.mulf %197, %198 : vector<8x8xf32>
    %cst_75 = arith.constant dense<0xFF800000> : vector<8xf32>
    %200 = vector.multi_reduction <maximumf>, %199, %cst_75 [1] : vector<8x8xf32> to vector<8xf32>
    %201 = vector.shape_cast %200 : vector<8xf32> to vector<8x1xf32>
    %202 = vector.broadcast %201 : vector<8x1xf32> to vector<8x8xf32>
    %203 = arith.subf %199, %202 : vector<8x8xf32>
    %204 = math.exp %203 : vector<8x8xf32>
    %cst_76 = arith.constant dense<0.000000e+00> : vector<8xf32>
    %205 = vector.multi_reduction <add>, %204, %cst_76 [1] : vector<8x8xf32> to vector<8xf32>
    %206 = vector.shape_cast %205 : vector<8xf32> to vector<8x1xf32>
    %207 = vector.broadcast %206 : vector<8x1xf32> to vector<8x8xf32>
    %208 = arith.divf %204, %207 : vector<8x8xf32>
    %cst_77 = arith.constant dense<0.000000e+00> : vector<8x8xf32>
    %209 = tpu.matmul %208, %196, %cst_77 {dimension_numbers = #tpu.dot_dimension_numbers<[1], [0], [0], [1], [0, 0, 1, 1], [], []>} : vector<8x8xf32>, vector<8x8xf32>, vector<8x8xf32> -> vector<8x8xf32>
    %210 = vector.extract_strided_slice %192 {offsets = [0, 0], sizes = [8, 32], strides = [1, 1]} : vector<32x32xf32> to vector<8x32xf32>
    %cst_78 = arith.constant dense<0.000000e+00> : vector<8x32xf32>
    %211 = tpu.matmul %209, %210, %cst_78 {dimension_numbers = #tpu.dot_dimension_numbers<[1], [0], [0], [1], [0, 0, 1, 1], [], []>} : vector<8x8xf32>, vector<8x32xf32>, vector<8x32xf32> -> vector<8x32xf32>
    %212 = vector.broadcast %193 : vector<1x32xf32> to vector<8x32xf32>
    %213 = arith.addf %212, %211 : vector<8x32xf32>
    %214 = vector.extract_strided_slice %178 {offsets = [0, 8], sizes = [8, 8], strides = [1, 1]} : vector<8x32xf32> to vector<8x8xf32>
    %215 = vector.extract_strided_slice %184 {offsets = [0, 8], sizes = [8, 8], strides = [1, 1]} : vector<8x32xf32> to vector<8x8xf32>
    %216 = vector.extract_strided_slice %190 {offsets = [0, 8], sizes = [8, 8], strides = [1, 1]} : vector<8x32xf32> to vector<8x8xf32>
    %cst_79 = arith.constant dense<0.000000e+00> : vector<8x8xf32>
    %217 = tpu.matmul %214, %215, %cst_79 {dimension_numbers = #tpu.dot_dimension_numbers<[1], [1], [0], [0], [0, 0, 1, 0], [], []>} : vector<8x8xf32>, vector<8x8xf32>, vector<8x8xf32> -> vector<8x8xf32>
    %cst_80 = arith.constant 0.353553385 : f32
    %218 = vector.broadcast %cst_80 : f32 to vector<8x8xf32>
    %219 = arith.mulf %217, %218 : vector<8x8xf32>
    %cst_81 = arith.constant dense<0xFF800000> : vector<8xf32>
    %220 = vector.multi_reduction <maximumf>, %219, %cst_81 [1] : vector<8x8xf32> to vector<8xf32>
    %221 = vector.shape_cast %220 : vector<8xf32> to vector<8x1xf32>
    %222 = vector.broadcast %221 : vector<8x1xf32> to vector<8x8xf32>
    %223 = arith.subf %219, %222 : vector<8x8xf32>
    %224 = math.exp %223 : vector<8x8xf32>
    %cst_82 = arith.constant dense<0.000000e+00> : vector<8xf32>
    %225 = vector.multi_reduction <add>, %224, %cst_82 [1] : vector<8x8xf32> to vector<8xf32>
    %226 = vector.shape_cast %225 : vector<8xf32> to vector<8x1xf32>
    %227 = vector.broadcast %226 : vector<8x1xf32> to vector<8x8xf32>
    %228 = arith.divf %224, %227 : vector<8x8xf32>
    %cst_83 = arith.constant dense<0.000000e+00> : vector<8x8xf32>
    %229 = tpu.matmul %228, %216, %cst_83 {dimension_numbers = #tpu.dot_dimension_numbers<[1], [0], [0], [1], [0, 0, 1, 1], [], []>} : vector<8x8xf32>, vector<8x8xf32>, vector<8x8xf32> -> vector<8x8xf32>
    %230 = vector.extract_strided_slice %192 {offsets = [8, 0], sizes = [8, 32], strides = [1, 1]} : vector<32x32xf32> to vector<8x32xf32>
    %cst_84 = arith.constant dense<0.000000e+00> : vector<8x32xf32>
    %231 = tpu.matmul %229, %230, %cst_84 {dimension_numbers = #tpu.dot_dimension_numbers<[1], [0], [0], [1], [0, 0, 1, 1], [], []>} : vector<8x8xf32>, vector<8x32xf32>, vector<8x32xf32> -> vector<8x32xf32>
    %232 = arith.addf %213, %231 : vector<8x32xf32>
    %233 = vector.extract_strided_slice %178 {offsets = [0, 16], sizes = [8, 8], strides = [1, 1]} : vector<8x32xf32> to vector<8x8xf32>
    %234 = vector.extract_strided_slice %184 {offsets = [0, 16], sizes = [8, 8], strides = [1, 1]} : vector<8x32xf32> to vector<8x8xf32>
    %235 = vector.extract_strided_slice %190 {offsets = [0, 16], sizes = [8, 8], strides = [1, 1]} : vector<8x32xf32> to vector<8x8xf32>
    %cst_85 = arith.constant dense<0.000000e+00> : vector<8x8xf32>
    %236 = tpu.matmul %233, %234, %cst_85 {dimension_numbers = #tpu.dot_dimension_numbers<[1], [1], [0], [0], [0, 0, 1, 0], [], []>} : vector<8x8xf32>, vector<8x8xf32>, vector<8x8xf32> -> vector<8x8xf32>
    %cst_86 = arith.constant 0.353553385 : f32
    %237 = vector.broadcast %cst_86 : f32 to vector<8x8xf32>
    %238 = arith.mulf %236, %237 : vector<8x8xf32>
    %cst_87 = arith.constant dense<0xFF800000> : vector<8xf32>
    %239 = vector.multi_reduction <maximumf>, %238, %cst_87 [1] : vector<8x8xf32> to vector<8xf32>
    %240 = vector.shape_cast %239 : vector<8xf32> to vector<8x1xf32>
    %241 = vector.broadcast %240 : vector<8x1xf32> to vector<8x8xf32>
    %242 = arith.subf %238, %241 : vector<8x8xf32>
    %243 = math.exp %242 : vector<8x8xf32>
    %cst_88 = arith.constant dense<0.000000e+00> : vector<8xf32>
    %244 = vector.multi_reduction <add>, %243, %cst_88 [1] : vector<8x8xf32> to vector<8xf32>
    %245 = vector.shape_cast %244 : vector<8xf32> to vector<8x1xf32>
    %246 = vector.broadcast %245 : vector<8x1xf32> to vector<8x8xf32>
    %247 = arith.divf %243, %246 : vector<8x8xf32>
    %cst_89 = arith.constant dense<0.000000e+00> : vector<8x8xf32>
    %248 = tpu.matmul %247, %235, %cst_89 {dimension_numbers = #tpu.dot_dimension_numbers<[1], [0], [0], [1], [0, 0, 1, 1], [], []>} : vector<8x8xf32>, vector<8x8xf32>, vector<8x8xf32> -> vector<8x8xf32>
    %249 = vector.extract_strided_slice %192 {offsets = [16, 0], sizes = [8, 32], strides = [1, 1]} : vector<32x32xf32> to vector<8x32xf32>
    %cst_90 = arith.constant dense<0.000000e+00> : vector<8x32xf32>
    %250 = tpu.matmul %248, %249, %cst_90 {dimension_numbers = #tpu.dot_dimension_numbers<[1], [0], [0], [1], [0, 0, 1, 1], [], []>} : vector<8x8xf32>, vector<8x32xf32>, vector<8x32xf32> -> vector<8x32xf32>
    %251 = arith.addf %232, %250 : vector<8x32xf32>
    %252 = vector.extract_strided_slice %178 {offsets = [0, 24], sizes = [8, 8], strides = [1, 1]} : vector<8x32xf32> to vector<8x8xf32>
    %253 = vector.extract_strided_slice %184 {offsets = [0, 24], sizes = [8, 8], strides = [1, 1]} : vector<8x32xf32> to vector<8x8xf32>
    %254 = vector.extract_strided_slice %190 {offsets = [0, 24], sizes = [8, 8], strides = [1, 1]} : vector<8x32xf32> to vector<8x8xf32>
    %cst_91 = arith.constant dense<0.000000e+00> : vector<8x8xf32>
    %255 = tpu.matmul %252, %253, %cst_91 {dimension_numbers = #tpu.dot_dimension_numbers<[1], [1], [0], [0], [0, 0, 1, 0], [], []>} : vector<8x8xf32>, vector<8x8xf32>, vector<8x8xf32> -> vector<8x8xf32>
    %cst_92 = arith.constant 0.353553385 : f32
    %256 = vector.broadcast %cst_92 : f32 to vector<8x8xf32>
    %257 = arith.mulf %255, %256 : vector<8x8xf32>
    %cst_93 = arith.constant dense<0xFF800000> : vector<8xf32>
    %258 = vector.multi_reduction <maximumf>, %257, %cst_93 [1] : vector<8x8xf32> to vector<8xf32>
    %259 = vector.shape_cast %258 : vector<8xf32> to vector<8x1xf32>
    %260 = vector.broadcast %259 : vector<8x1xf32> to vector<8x8xf32>
    %261 = arith.subf %257, %260 : vector<8x8xf32>
    %262 = math.exp %261 : vector<8x8xf32>
    %cst_94 = arith.constant dense<0.000000e+00> : vector<8xf32>
    %263 = vector.multi_reduction <add>, %262, %cst_94 [1] : vector<8x8xf32> to vector<8xf32>
    %264 = vector.shape_cast %263 : vector<8xf32> to vector<8x1xf32>
    %265 = vector.broadcast %264 : vector<8x1xf32> to vector<8x8xf32>
    %266 = arith.divf %262, %265 : vector<8x8xf32>
    %cst_95 = arith.constant dense<0.000000e+00> : vector<8x8xf32>
    %267 = tpu.matmul %266, %254, %cst_95 {dimension_numbers = #tpu.dot_dimension_numbers<[1], [0], [0], [1], [0, 0, 1, 1], [], []>} : vector<8x8xf32>, vector<8x8xf32>, vector<8x8xf32> -> vector<8x8xf32>
    %268 = vector.extract_strided_slice %192 {offsets = [24, 0], sizes = [8, 32], strides = [1, 1]} : vector<32x32xf32> to vector<8x32xf32>
    %cst_96 = arith.constant dense<0.000000e+00> : vector<8x32xf32>
    %269 = tpu.matmul %267, %268, %cst_96 {dimension_numbers = #tpu.dot_dimension_numbers<[1], [0], [0], [1], [0, 0, 1, 1], [], []>} : vector<8x8xf32>, vector<8x32xf32>, vector<8x32xf32> -> vector<8x32xf32>
    %270 = arith.addf %251, %269 : vector<8x32xf32>
    %271 = arith.addf %172, %270 : vector<8x32xf32>
    %cst_97 = arith.constant dense<0.000000e+00> : vector<8xf32>
    %272 = vector.multi_reduction <add>, %271, %cst_97 [1] : vector<8x32xf32> to vector<8xf32>
    %273 = vector.shape_cast %272 : vector<8xf32> to vector<8x1xf32>
    %cst_98 = arith.constant 3.200000e+01 : f32
    %274 = vector.broadcast %cst_98 : f32 to vector<8x1xf32>
    %275 = arith.divf %273, %274 : vector<8x1xf32>
    %276 = vector.broadcast %275 : vector<8x1xf32> to vector<8x32xf32>
    %277 = arith.subf %271, %276 : vector<8x32xf32>
    %278 = vector.broadcast %275 : vector<8x1xf32> to vector<8x32xf32>
    %279 = arith.subf %271, %278 : vector<8x32xf32>
    %280 = arith.mulf %277, %279 : vector<8x32xf32>
    %cst_99 = arith.constant dense<0.000000e+00> : vector<8xf32>
    %281 = vector.multi_reduction <add>, %280, %cst_99 [1] : vector<8x32xf32> to vector<8xf32>
    %282 = vector.shape_cast %281 : vector<8xf32> to vector<8x1xf32>
    %cst_100 = arith.constant 3.200000e+01 : f32
    %283 = vector.broadcast %cst_100 : f32 to vector<8x1xf32>
    %284 = arith.divf %282, %283 : vector<8x1xf32>
    %285 = vector.broadcast %275 : vector<8x1xf32> to vector<8x32xf32>
    %286 = arith.subf %271, %285 : vector<8x32xf32>
    %cst_101 = arith.constant 9.99999974E-6 : f32
    %287 = vector.broadcast %cst_101 : f32 to vector<8x1xf32>
    %288 = arith.addf %284, %287 : vector<8x1xf32>
    %289 = math.rsqrt %288 : vector<8x1xf32>
    %290 = vector.broadcast %289 : vector<8x1xf32> to vector<8x32xf32>
    %291 = arith.mulf %286, %290 : vector<8x32xf32>
    %292 = vector.extract_strided_slice %5 {offsets = [4, 0], sizes = [1, 32], strides = [1, 1]} : vector<16x32xf32> to vector<1x32xf32>
    %293 = vector.broadcast %292 : vector<1x32xf32> to vector<8x32xf32>
    %294 = arith.mulf %291, %293 : vector<8x32xf32>
    %295 = vector.extract_strided_slice %5 {offsets = [5, 0], sizes = [1, 32], strides = [1, 1]} : vector<16x32xf32> to vector<1x32xf32>
    %296 = vector.broadcast %295 : vector<1x32xf32> to vector<8x32xf32>
    %297 = arith.addf %294, %296 : vector<8x32xf32>
    %c8 = arith.constant 8 : index
    %c0_102 = arith.constant 0 : index
    %c0_103 = arith.constant 0 : index
    %298 = vector.load %arg4[%c8, %c0_102, %c0_103] : memref<10x32x32xf32, #tpu.memory_space<vmem>>, vector<1x32x32xf32>
    %299 = vector.shape_cast %298 : vector<1x32x32xf32> to vector<32x32xf32>
    %cst_104 = arith.constant dense<0.000000e+00> : vector<8x32xf32>
    %300 = tpu.matmul %297, %299, %cst_104 {dimension_numbers = #tpu.dot_dimension_numbers<[1], [0], [0], [1], [0, 0, 1, 1], [], []>} : vector<8x32xf32>, vector<32x32xf32>, vector<8x32xf32> -> vector<8x32xf32>
    %301 = vector.extract_strided_slice %5 {offsets = [14, 0], sizes = [1, 32], strides = [1, 1]} : vector<16x32xf32> to vector<1x32xf32>
    %302 = vector.broadcast %301 : vector<1x32xf32> to vector<8x32xf32>
    %303 = arith.addf %300, %302 : vector<8x32xf32>
    %cst_105 = arith.constant 0.000000e+00 : f32
    %304 = vector.broadcast %cst_105 : f32 to vector<8x32xf32>
    %305 = arith.maximumf %303, %304 : vector<8x32xf32>
    %c9 = arith.constant 9 : index
    %c0_106 = arith.constant 0 : index
    %c0_107 = arith.constant 0 : index
    %306 = vector.load %arg4[%c9, %c0_106, %c0_107] : memref<10x32x32xf32, #tpu.memory_space<vmem>>, vector<1x32x32xf32>
    %307 = vector.shape_cast %306 : vector<1x32x32xf32> to vector<32x32xf32>
    %cst_108 = arith.constant dense<0.000000e+00> : vector<8x32xf32>
    %308 = tpu.matmul %305, %307, %cst_108 {dimension_numbers = #tpu.dot_dimension_numbers<[1], [0], [0], [1], [0, 0, 1, 1], [], []>} : vector<8x32xf32>, vector<32x32xf32>, vector<8x32xf32> -> vector<8x32xf32>
    %309 = vector.extract_strided_slice %5 {offsets = [15, 0], sizes = [1, 32], strides = [1, 1]} : vector<16x32xf32> to vector<1x32xf32>
    %310 = vector.broadcast %309 : vector<1x32xf32> to vector<8x32xf32>
    %311 = arith.addf %308, %310 : vector<8x32xf32>
    %312 = arith.addf %297, %311 : vector<8x32xf32>
    %c0_109 = arith.constant 0 : index
    %c0_110 = arith.constant 0 : index
    %c0_111 = arith.constant 0 : index
    %313 = vector.load %arg6[%c0_109, %c0_110, %c0_111] : memref<1x8x32xf32, #tpu.memory_space<vmem>>, vector<1x8x32xf32>
    %314 = vector.shape_cast %313 : vector<1x8x32xf32> to vector<8x32xf32>
    %315 = vector.shape_cast %312 : vector<8x32xf32> to vector<1x8x32xf32>
    tpu.vector_store %arg6[%c0_109, %c0_110, %c0_111], %315 {strides = array<i32>} : memref<1x8x32xf32, #tpu.memory_space<vmem>>, vector<1x8x32xf32>,
    return
  }
  func.func @transform_0(%arg0: i32) -> (i32, i32, i32) {
    %c0_i32 = arith.constant 0 : i32
    %c0_i32_0 = arith.constant 0 : i32
    %c0_i32_1 = arith.constant 0 : i32
    return %arg0, %c0_i32, %c0_i32_0 : i32, i32, i32
  }
  func.func @transform_1(%arg0: i32) -> (i32, i32, i32) {
    %c0_i32 = arith.constant 0 : i32
    %c0_i32_0 = arith.constant 0 : i32
    %c0_i32_1 = arith.constant 0 : i32
    return %arg0, %c0_i32, %c0_i32_0 : i32, i32, i32
  }
  func.func @transform_2(%arg0: i32) -> (i32, i32) {
    %c0_i32 = arith.constant 0 : i32
    %c0_i32_0 = arith.constant 0 : i32
    %c0_i32_1 = arith.constant 0 : i32
    return %c0_i32, %c0_i32_0 : i32, i32
  }
  func.func @transform_3(%arg0: i32) -> (i32, i32, i32) {
    %c0_i32 = arith.constant 0 : i32
    %c0_i32_0 = arith.constant 0 : i32
    %c0_i32_1 = arith.constant 0 : i32
    %c0_i32_2 = arith.constant 0 : i32
    return %c0_i32, %c0_i32_0, %c0_i32_1 : i32, i32, i32
  }
  func.func @transform_4(%arg0: i32) -> (i32, i32) {
    %c0_i32 = arith.constant 0 : i32
    %c0_i32_0 = arith.constant 0 : i32
    %c0_i32_1 = arith.constant 0 : i32
    return %c0_i32, %c0_i32_0 : i32, i32
  }
  func.func @transform_5(%arg0: i32) -> (i32, i32, i32) {
    %c0_i32 = arith.constant 0 : i32
    %c0_i32_0 = arith.constant 0 : i32
    %c0_i32_1 = arith.constant 0 : i32
    return %arg0, %c0_i32, %c0_i32_0 : i32, i32, i32
  }
}

</mosaic_0001>

<bundles_post_ra>
// kernel: tpu_custom_call.1
= control target key start
LH: loop header
LB: loop body
LE: loop exit
PB: predicated region body
PF: predicated region fallthrough
CT: control target
= control target key end

     0   :  { %s4497_s0 = inlined_call_operand.hbm [shape: f32[2,8,32], index: 0, kind: input, shape index: {}]   ;;  %s4498_s1 = inlined_call_operand.hbm [shape: f32[2,8,32], index: 1, kind: input, shape index: {}]   ;;  %s4499_s2 = inlined_call_operand.hbm [shape: f32[8,8], index: 2, kind: input, shape index: {}]   ;;  %s4500_s3 = inlined_call_operand.hbm [shape: f32[10,32,32], index: 3, kind: input, shape index: {}]   ;;  %s4501_s4 = inlined_call_operand.hbm [shape: f32[16,32], index: 4, kind: input, shape index: {}]   ;;  %s4502_s5 = inlined_call_operand.hbm [shape: f32[2,8,32], index: 5, kind: output, shape index: {}]  }
   0x1   :  { %4507 = sst [smem:[#allocation17_spill]] %s4499_s2 }
   0x2   :  { %4508 = sst [smem:[#allocation18_spill]] %s4500_s3 }
   0x3   :  { %10 = vsyncpa [#allocation3], 0 }
   0x4   :  { %12 = vsyncpa [#allocation3 + $0x1], 0 }
   0x5   :  { %13 = vsyncpa [#allocation6], 0 }
   0x6   :  { %15 = vsyncpa [#allocation6 + $0x1], 0 }
   0x7   :  { %16 = vsyncpa [#allocation9], 0 }
   0x8   :  { %17 = vsyncpa [#allocation4], 0 }
   0x9   :  { %19 = vsyncpa [#allocation4 + $0x1], 0  ;;  %s3917_s18 = smov 0   ;;  %s3919_s19 = smov 0  }
   0xa   :  { %s3921_s20 = smov 0   ;;  %s3923_s21 = smov 0  }
   0xb LB: > { %s3938_s22 = sadd.s32 4294967295, %s3871_s21   ;;  %s3116_s23 = sadd.s32 4294967294, %s3871_s21   ;;  %s3871_s21 = sphi %s3923_s21, %s4531_s21   ;;  %s3867_s20 = sphi %s3921_s20, %s4530_s20   ;;  %s3863_s19 = sphi %s3919_s19, %s4529_s19   ;;  %s3859_s18 = sphi %s3917_s18, %s4528_s18  }
   0xc   : > { %p45_p0 = scmp.ne.s32.totalorder %s3863_s19, %s3859_s18  ;;  %p4503_p1 = scmp.eq.s32.totalorder %s3938_s22, 0 }
   0xd   : > { %p164_p3 = scmp.eq.s32.totalorder %s3116_s23, 1  ;;  %p3117_p5 = scmp.ge.s32.totalorder %s3871_s21, 1 }
   0xe   : > { %p3947_p4 = por %p4503_p1, %p45_p0  ;;  %p171_p7 = scmp.lt.s32.totalorder %s3871_s21, 3 }
   0xf   : > { %p3952_p6 = por %p164_p3, %p45_p0  ;;  %s3873_s27 = smov [#allocation7]  }
  0x10   : > { %s4509_s24 = scalar_select %p3947_p4, 1, 0 }
  0x11   : > { %s4510_s25 = scalar_select %p3952_p6, 1, 0 }
  0x12   : > { %p3957_p8 = pnand %p3117_p5, %p171_p7  ;;  %s184_s28 = sshll.u32 %s3873_s27, 4  ;;  %s185_s28 = int_to_ptr.vmem [resolvable:$true] %s184_s28 }
  0x13   : > { %s3874_s29 = smov [#allocation8]   ;;  %s3875_s7 = smov [#allocation10]  }
  0x14   : > { %s4511_s26 = scalar_select %p3957_p8, 1, 0 }
  0x15   : > { %p3539_p10 = pneg %p3957_p8  ;;  %s194_s30 = sshll.u32 %s3874_s29, 4  ;;  %s3970_s30 = int_to_ptr.vmem [resolvable:$true] %s194_s30 }
  0x16   : > { %s3972_s8 = sshll.u32 %s3875_s7, 4  ;;  %s4513_s2 = sld [smem:[#allocation17_spill]]  ;;  %s208_s8 = int_to_ptr.vmem [resolvable:$true] %s3972_s8 }
  0x17   : > { %p3966_p11 = pnand %p3539_p10, %p4503_p1 }
  0x19   : > { %p3982_p13 = pneg %p3966_p11 }
  0x1c   : > { %s3649_s11 = scalar_lea.hbm %s4513_s2, 128 }
  0x1d   : > { %p3650_p12 = scmp.ne.s32.totalorder %s4513_s2, %s3649_s11  ;;  %p3656_p5 = scmp.lt.u32.totalorder %s3649_s11, %s4513_s2 }
  0x1f   : > { %p3652_p0 = pnand %p3982_p13, %p3650_p12 }
  0x21   : > { %p3653_p3 = pneg %p3652_p0 }
  0x23   : > { %p3658_p7 = pnand %p3656_p5, %p3653_p3 }
  0x25   : > { %3661 = shalt.err (!%p3658_p7)
}
  0x26   : > { %s3662_s17 = scalar_lea.vmem %s185_s28, 128  ;;  %p3670_p2 = scmp.lt.s32.totalorder %s185_s28, %s185_s28 }
  0x27   : > { %p3663_p10 = scmp.ne.s32.totalorder %s185_s28, %s3662_s17  ;;  %p3671_p6 = scmp.lt.s32.totalorder %s3662_s17, %s3662_s17 }
  0x29   : > { %p3665_p9 = pnand %p3663_p10, %p3982_p13  ;;  %p3672_p4 = por %p3671_p6, %p3670_p2 }
  0x2b   : > { %p3666_p1 = pneg %p3665_p9 }
  0x2d   : > { %p3673_p8 = pnand %p3672_p4, %p3666_p1 }
  0x2f   : > { %3676 = shalt.err (!%p3673_p8)
}
  0x30   : > { %3542 = dma.hbm_to_vmem [thread:$0]  (!%p3966_p11), %s4513_s2, 128, %s185_s28, [#allocation6]  }
  0x31   : > { %s4515_s3 = sld [smem:[#allocation18_spill]] }
  0x37   : > { %s3677_s9 = scalar_lea.hbm %s4515_s3, 5120 }
  0x38   : > { %p3678_p9 = scmp.ne.s32.totalorder %s4515_s3, %s3677_s9  ;;  %p3684_p1 = scmp.lt.u32.totalorder %s3677_s9, %s4515_s3 }
  0x3a   : > { %p3680_p12 = pnand %p3678_p9, %p3982_p13 }
  0x3c   : > { %p3681_p2 = pneg %p3680_p12 }
  0x3e   : > { %p3686_p4 = pnand %p3684_p1, %p3681_p2 }
  0x40   : > { %3689 = shalt.err (!%p3686_p4)
}
  0x41   : > { %s3690_s28 = scalar_lea.vmem %s3970_s30, 5120  ;;  %p3698_p3 = scmp.lt.s32.totalorder %s3970_s30, %s3970_s30 }
  0x42   : > { %p3691_p6 = scmp.ne.s32.totalorder %s3970_s30, %s3690_s28  ;;  %p3699_p5 = scmp.lt.s32.totalorder %s3690_s28, %s3690_s28 }
  0x44   : > { %p3693_p8 = pnand %p3691_p6, %p3982_p13  ;;  %p3700_p7 = por %p3699_p5, %p3698_p3 }
  0x46   : > { %p3694_p0 = pneg %p3693_p8 }
  0x48   : > { %p3701_p10 = pnand %p3700_p7, %p3694_p0 }
  0x4a   : > { %3704 = shalt.err (!%p3701_p10)
}
  0x4b   : > { %s3876_s15 = smov 128   ;;  %s3877_s16 = smov 8  }
  0x4c   : > { %3545 = dma.hbm_to_vmem [thread:$0]  (!%p3966_p11), %s4515_s3, 5120, %s3970_s30, [#allocation9], %s3876_s15, %s3876_s15, %s3877_s16  }
  0x4d   : > { %s3705_s7 = scalar_lea.hbm %s4501_s4, 256 }
  0x4e   : > { %p3706_p9 = scmp.ne.s32.totalorder %s4501_s4, %s3705_s7  ;;  %p3712_p1 = scmp.lt.u32.totalorder %s3705_s7, %s4501_s4 }
  0x50   : > { %p3708_p12 = pnand %p3706_p9, %p3982_p13 }
  0x52   : > { %p3709_p2 = pneg %p3708_p12 }
  0x54   : > { %p3714_p4 = pnand %p3712_p1, %p3709_p2 }
  0x56   : > { %3717 = shalt.err (!%p3714_p4)
}
  0x57   : > { %s3718_s13 = scalar_lea.vmem %s208_s8, 256  ;;  %p3726_p3 = scmp.lt.s32.totalorder %s208_s8, %s208_s8 }
  0x58   : > { %p3719_p6 = scmp.ne.s32.totalorder %s208_s8, %s3718_s13  ;;  %p3727_p5 = scmp.lt.s32.totalorder %s3718_s13, %s3718_s13 }
  0x5a   : > { %p3721_p8 = pnand %p3719_p6, %p3982_p13  ;;  %p3728_p7 = por %p3727_p5, %p3726_p3 }
  0x5c   : > { %p3722_p0 = pneg %p3721_p8 }
  0x5e   : > { %p3729_p10 = pnand %p3728_p7, %p3722_p0 }
  0x60   : > { %3732 = shalt.err (!%p3729_p10)
}
  0x61   : > { %3548 = dma.hbm_to_vmem [thread:$0]  (!%p3966_p11), %s4501_s4, 256, %s208_s8, [#allocation9], %s3876_s15, %s3876_s15, %s3877_s16  }
  0x62   : > { %s4041_s14 = sadd.s32 1, %s3871_s21   ;;  %s32_s6 = sadd.s32 1, %s3867_s20 }
  0x63   : > { %s29_s17 = ssub.s32 %s3871_s21, %s4041_s14  ;;  %p39_p9 = scmp.ne.s32.totalorder %s3867_s20, %s3863_s19 }
  0x64   : > { %p30_p13 = scmp.eq.s32.totalorder %s29_s17, 0  ;;  %p40_p12 = scmp.eq.s32.totalorder %s3871_s21, 0 }
  0x65   : > { %p3563_p2 = scmp.lt.s32.totalorder %s3871_s21, 2  ;;  %p4516_p4 = scmp.eq.s32.totalorder %s3938_s22, 1 }
  0x66   : > { %s4051_s23 = scalar_select %p30_p13, %s3867_s20, %s32_s6  }
  0x67   : > { %p41_p1 = por %p40_p12, %p39_p9  ;;  %p4055_p6 = por %p4516_p4, %p39_p9 }
  0x68   : > { %s221_s29 = sand.u32 1, %s3867_s20   ;;  %s3123_s7 = sshll.u32 %s3871_s21, 7 }
  0x69   : > { %s4517_s27 = scalar_select %p4055_p6, 1, 0 }
  0x6a   : > { %s4061_s8 = sshll.u32 %s221_s29, 3  ;;  %s4066_s9 = scalar_lea.hbm %s4497_s0, %s3123_s7 }
  0x6b   : > { %s225_s10 = scalar_lea.vmem [#allocation2], %s4061_s8  ;;  %p4069_p11 = pnand %p3563_p2, %p41_p1 }
  0x6c   : > { %s232_s11 = sshll.u32 %s225_s10, 4  ;;  %s4078_s28 = scalar_lea.hbm %s4498_s1, %s3123_s7  ;;  %s4073_s11 = int_to_ptr.vmem [resolvable:$true] %s232_s11 }
  0x6d   : > { %s222_s17 = scalar_lea.sflag [#allocation3], %s221_s29  ;;  %s3733_s6 = scalar_lea.hbm %s4066_s9, 128 }
  0x6e   : > { %p3734_p8 = scmp.ne.s32.totalorder %s4066_s9, %s3733_s6  ;;  %p3735_p0 = pneg %p4069_p11 }
  0x6f   : > { %s3738_s10 = scalar_lea.hbm %s4497_s0, 256  ;;  %p3739_p7 = scmp.lt.u32.totalorder %s4066_s9, %s4497_s0 }
  0x70   : > { %p3736_p3 = pnand %p3735_p0, %p3734_p8  ;;  %p3740_p10 = scmp.lt.u32.totalorder %s3738_s10, %s3733_s6 }
  0x71   : > { %p3742_p9 = scmp.lt.u32.totalorder %s3733_s6, %s4066_s9 }
  0x72   : > { %p3737_p5 = pneg %p3736_p3  ;;  %p3741_p13 = por %p3740_p10, %p3739_p7 }
  0x74   : > { %p3743_p12 = por %p3742_p9, %p3741_p13 }
  0x76   : > { %p3744_p2 = pnand %p3743_p12, %p3737_p5 }
  0x78   : > { %3747 = shalt.err (!%p3744_p2)
}
  0x79   : > { %s3748_s29 = scalar_lea.vmem %s4073_s11, 128  ;;  %s3878_s7 = smov [#allocation2]  }
  0x7a   : > { %p3749_p1 = scmp.ne.s32.totalorder %s4073_s11, %s3748_s29  ;;  %s3753_s13 = sshll.u32 %s3878_s7, 4  ;;  %s3754_s13 = int_to_ptr.vmem [resolvable:$false] %s3753_s13 }
  0x7b   : > { %s3755_s2 = scalar_lea.vmem %s3754_s13, 256  ;;  %p3756_p3 = scmp.lt.s32.totalorder %s4073_s11, %s3754_s13 }
  0x7c   : > { %p3751_p4 = pnand %p3749_p1, %p3735_p0  ;;  %p3757_p7 = scmp.lt.s32.totalorder %s3755_s2, %s3748_s29 }
  0x7e   : > { %p3752_p8 = pneg %p3751_p4  ;;  %p3758_p10 = por %p3757_p7, %p3756_p3 }
  0x80   : > { %p3759_p13 = pnand %p3758_p10, %p3752_p8 }
  0x82   : > { %3762 = shalt.err (!%p3759_p13)
}
  0x83   : > { %3552 = dma.hbm_to_vmem [thread:$0]  (!%p4069_p11), %s4066_s9, 128, %s4073_s11, %s222_s17  }
  0x84   : > { %s239_s3 = sand.u32 1, %s3871_s21   ;;  %s243_s30 = scalar_lea.vmem [#allocation5], %s4061_s8 }
  0x85   : > { %s250_s6 = sshll.u32 %s243_s30, 4  ;;  %s240_s15 = scalar_lea.sflag [#allocation6], %s239_s3  ;;  %s251_s6 = int_to_ptr.vmem [resolvable:$true] %s250_s6 }
  0x86   : > { %s3763_s16 = scalar_lea.hbm %s4078_s28, 128  ;;  %s3768_s7 = scalar_lea.hbm %s4498_s1, 256 }
  0x87   : > { %p3764_p5 = scmp.ne.s32.totalorder %s4078_s28, %s3763_s16  ;;  %p3769_p2 = scmp.lt.u32.totalorder %s4078_s28, %s4498_s1 }
  0x88   : > { %p3770_p1 = scmp.lt.u32.totalorder %s3768_s7, %s3763_s16  ;;  %p3772_p8 = scmp.lt.u32.totalorder %s3763_s16, %s4078_s28 }
  0x89   : > { %p3766_p9 = pnand %p3764_p5, %p3735_p0 }
  0x8a   : > { %p3771_p4 = por %p3770_p1, %p3769_p2 }
  0x8b   : > { %p3767_p12 = pneg %p3766_p9 }
  0x8c   : > { %p3773_p3 = por %p3772_p8, %p3771_p4 }
  0x8e   : > { %p3774_p7 = pnand %p3773_p3, %p3767_p12 }
  0x90   : > { %3777 = shalt.err (!%p3774_p7)
}
  0x91   : > { %s3778_s8 = scalar_lea.vmem %s251_s6, 128  ;;  %s3879_s9 = smov [#allocation5]  }
  0x92   : > { %p3779_p10 = scmp.ne.s32.totalorder %s251_s6, %s3778_s8  ;;  %s3783_s11 = sshll.u32 %s3879_s9, 4  ;;  %s3784_s11 = int_to_ptr.vmem [resolvable:$false] %s3783_s11 }
  0x93   : > { %s3785_s17 = scalar_lea.vmem %s3784_s11, 256  ;;  %p3786_p9 = scmp.lt.s32.totalorder %s251_s6, %s3784_s11 }
  0x94   : > { %p3781_p13 = pnand %p3779_p10, %p3735_p0  ;;  %p3787_p6 = scmp.lt.s32.totalorder %s3785_s17, %s3778_s8 }
  0x96   : > { %p3782_p5 = pneg %p3781_p13  ;;  %p3788_p1 = por %p3787_p6, %p3786_p9 }
  0x98   : > { %p3789_p2 = pnand %p3788_p1, %p3782_p5 }
  0x9a   : > { %3792 = shalt.err (!%p3789_p2)
}
  0x9b   : > { %3555 = dma.hbm_to_vmem [thread:$0]  (!%p4069_p11), %s4078_s28, 128, %s251_s6, %s240_s15  }
  0x9c   : > { %p4519_p12 = scmp.ne.s32.totalorder %s4511_s26, 0 }
  0x9d   : > { %s4129_s3 = sand.u32 (!%p4519_p12), 1, %s3863_s19   ;;  %p4520_p6 = scmp.ne.s32.totalorder (!%p4519_p12), %s4509_s24, 0 }
  0x9e   : > { %259 = sbr.rel (%p4519_p12) target bundleno = 7101 (0x1bbd), region = 40  ;;  %s4132_s30 = sshll.u32 (!%p4519_p12), %s4129_s3, 3 }
  0x9f   : > { %s262_s16 = scalar_lea.sflag (!%p4519_p12), [#allocation3], %s4129_s3  ;;  %s265_s10 = scalar_lea.vmem (!%p4519_p12), [#allocation2], %s4132_s30 }
  0xa5   : > { %3838 = dma.done.wait (%p4520_p6), %s262_s16, 128  }
  0xa6   : > { %3840 = vsyncadd (%p4520_p6), %s262_s16, 4294967168  ;;  %s270_s26 = sand.u32 1, %s3938_s22   ;;  %s274_s28 = scalar_lea.vmem [#allocation5], %s4132_s30 }
  0xa7   : > { %s271_s12 = scalar_lea.sflag [#allocation6], %s270_s26 }
  0xa8   : > { %3842 = dma.done.wait (%p4520_p6), %s271_s12, 128  }
  0xa9   : > { %3844 = vsyncadd (%p4520_p6), %s271_s12, 4294967168  ;;  %p4521_p11 = scmp.eq.s32.totalorder %s3938_s22, 0 }
  0xab   : > { %3846 = dma.done.wait (%p4521_p11), [#allocation6], 128   ;;  %p4522_p0 = pmov %p4521_p11 }
  0xad   : > { %3848 = vsyncadd (%p4522_p0), [#allocation6], 4294967168  ;;  %p4523_p4 = pmov %p4522_p0 }
  0xae   : > { %p4524_p8 = pmov %p4522_p0 }
  0xaf   : > { %3850 = dma.done.wait (%p4523_p4), [#allocation9], 5376  }
  0xb0   : > { %3852 = vsyncadd (%p4524_p8), [#allocation9], 4294961920  ;;  %vm323_vm0 = vcmask 261120   ;;  %v318_v0 = vld [vmem:[%s265_s10] sm:$0xff]  ;;  %v349_v8 = vld [vmem:[#allocation8 + $0x8] sm:$0xff]  ;;  %v3880_v10 = vmov 0.0|0.0   ;;  %v338_v23 = vlaneseq }
  0xb1   : > { %v324_v1 = vsel %vm323_vm0, %v318_v0, 0.0  ;;  %v348_v7 = vld [vmem:[#allocation8] sm:$0xff]  ;;  %3473 = vmatprep.subr.bf16.mxu0 %v3880_v10  ;;  %3479 = vmatprep.subr.bf16.mxu1 %v3880_v10  ;;  %v431_v12 = vld [vmem:[#allocation8 + $0x28] sm:$0xff]  ;;  %v350_v13 = vld [vmem:[#allocation8 + $0x10] sm:$0xff]  ;;  %vm3881_vm1 = vmmov 0   ;;  %v3882_v18 = vmov 0.0  }
  0xb2   : > { %325 = vadd.xlane.f32.xlu0 %v324_v1  ;;  %v430_v9 = vld [vmem:[#allocation8 + $0x20] sm:$0xff]  ;;  %v3474_v11 = vpack.c.bf16 %v349_v8, %v348_v7  ;;  %v351_v14 = vld [vmem:[#allocation8 + $0x18] sm:$0xff]  ;;  %v432_v16 = vld [vmem:[#allocation8 + $0x30] sm:$0xff]  ;;  %3273 = vmatprep.mubr.msk.f32.mxu0 %vm3881_vm1, %v3882_v18  ;;  %v4166_v25 = vshrl.u32 %v338_v23, 7  ;;  %vm592_vm2 = vcmask 64512   ;;  %s3883_s24 = smov 120  }
  0xb3   : > { %v3480_v15 = vpack.c.bf16 %v431_v12, %v430_v9  ;;  %v433_v17 = vld [vmem:[#allocation8 + $0x38] sm:$0xff]  ;;  %3284 = vmatprep.mubr.msk.f32.mxu1 %vm3881_vm1, %v3882_v18  ;;  %v3477_v19 = vpack.c.bf16 %v351_v14, %v350_v13  ;;  %v4169_v27 = vld [vmem:[#allocation10] sm:$0xff]  ;;  %v510_v34 = vld [vmem:[#allocation8 + $0x48] sm:$0xff]  ;;  %s3884_s6 = smov 112   ;;  %s3885_s15 = smov 104  }
  0xb4   : > { %3475 = vmatpush3.bf16.msra.mxu0 %v3474_v11  ;;  %v3483_v20 = vpack.c.bf16 %v433_v17, %v432_v16  ;;  %v340_v26 = vsub.s32 0, %v4166_v25  ;;  %v345_v28 = vsub.s32 1, %v4166_v25  ;;  %v509_v33 = vld [vmem:[#allocation8 + $0x40] sm:$0xff]  ;;  %v511_v38 = vld [vmem:[#allocation8 + $0x50] sm:$0xff]  ;;  %v512_v39 = vld [vmem:[#allocation8 + $0x58] sm:$0xff]  ;;  %v436_v41 = vsub.s32 7, %v4166_v25 }
  0xb5   : > { %3481 = vmatpush3.bf16.msra.mxu1 %v3480_v15  ;;  %3476 = vmatprep.subr.bf16.mxu0 %v3880_v10  ;;  %v3486_v36 = vpack.c.bf16 %v510_v34, %v509_v33  ;;  %v3489_v40 = vpack.c.bf16 %v512_v39, %v511_v38  ;;  %v354_v42 = vsub.s32 6, %v4166_v25  ;;  %v4202_v50 = vld [vmem:[#allocation10 + $0x8] sm:$0xff]  ;;  %v4220_v56 = vld [vmem:[#allocation7] sm:$0xff]  ;;  %v588_v8 = vld [vmem:[#allocation8 + $0x60] sm:$0xff]  ;;  %s3174_s29 = sshll.u32 %s3938_s22, 7  ;;  %s317_s7 = scalar_lea.vmem [#allocation11], %s4132_s30 }
  0xb6   : > { %3482 = vmatprep.subr.bf16.mxu1 %v3880_v10  ;;  %v341_v29 = vrot.slane %v4169_v27, %v340_v26  ;;  %v346_v32 = vrot.slane %v4169_v27, %v345_v28  ;;  %v437_v43 = vrot.slane %v4169_v27, %v436_v41  ;;  %v516_v52 = vrot.slane %v4202_v50, %v340_v26  ;;  %v589_v34 = vld [vmem:[#allocation8 + $0x68] sm:$0xff]  ;;  %s2995_s13 = sshll.u32 %s317_s7, 4  ;;  %s4452_s9 = scalar_lea.hbm %s4502_s5, %s3174_s29  ;;  %s4454_s13 = int_to_ptr.vmem [resolvable:$true] %s2995_s13 }
  0xb7   : > { %v355_v44 = vrot.slane %v4169_v27, %v354_v42  ;;  %vm670_vm3 = vcmp.eq.f32.partialorder %v4220_v56, 0.0  ;;  %v591_v56 = vld [vmem:[#allocation8 + $0x78] sm:$0xff]  ;;  %s2982_s11 = scalar_lea.sflag [#allocation4], %s4129_s3  ;;  %s3793_s17 = scalar_lea.vmem %s4454_s13, 128 }
  0xb8   : > { %3478 = vmatpush3.bf16.msra.mxu0 %v3477_v19  ;;  %p3794_p3 = scmp.ne.s32.totalorder %s4454_s13, %s3793_s17  ;;  %p4525_p7 = scmp.ne.s32.totalorder %s4517_s27, 0 }
  0xb9   : > { %3484 = vmatpush3.bf16.msra.mxu1 %v3483_v20  ;;  %3485 = vmatprep.subr.bf16.mxu0 %v3880_v10  ;;  %s3886_s22 = smov [#allocation11]  }
  0xba   : > { %3298 = vmatprep.subr.mxu1 %v3882_v18  ;;  %p3795_p10 = pnand %p3794_p3, %p4525_p7  ;;  %s3797_s30 = sshll.u32 %s3886_s22, 4  ;;  %s3798_s30 = int_to_ptr.vmem [resolvable:$false] %s3797_s30 }
  0xbb   : > { %s3799_s16 = scalar_lea.vmem %s3798_s30, 256  ;;  %p3800_p5 = scmp.lt.s32.totalorder %s4454_s13, %s3798_s30 }
  0xbc   : > { %p3796_p13 = pneg %p3795_p10  ;;  %p3801_p9 = scmp.lt.s32.totalorder %s3799_s16, %s3793_s17 }
  0xbe   : > { %p3802_p1 = por %p3801_p9, %p3800_p5 }
  0xc0   : > { %p3803_p2 = pnand %p3802_p1, %p3796_p13 }
 0x13f   : > { %v326_v2 = vpop.xlane.xlu0 %325 }
 0x140   : > { %v328_v3 = vmul.f32 0.03125, %v326_v2 }
 0x142   : > { %v329_v4 = vsub.f32 %v318_v0, %v328_v3 }
 0x144   : > { %v330_v5 = vmul.f32 %v329_v4, %v329_v4 }
 0x146   : > { %v331_v6 = vsel %vm323_vm0, %v330_v5, 0.0 }
 0x147   : > { %332 = vadd.xlane.f32.xlu0 %v331_v6 }
 0x1d4   : > { %v333_v21 = vpop.xlane.xlu0 %332 }
 0x1d5   : > { %v334_v22 = vmul.f32 0.03125, %v333_v21 }
 0x1d7   : > { %v335_v24 = vadd.f32 1e-05, %v334_v22 }
 0x1d9   : > { %3611 = vrsqrt.f32 %v335_v24 }
 0x1e3   : > { %v3612_v30 = vpop.eup %3611 }
 0x1e4   : > { %v337_v31 = vmul.f32 %v3612_v30, %v329_v4 }
 0x1e6   : > { %v342_v35 = vmul.f32 %v341_v29, %v337_v31 }
 0x1e8   : > { %v4176_v37 = vadd.f32 %v346_v32, %v342_v35 }
 0x1ea   : > { %3274 = vmatmul.mubr.msk.f32.vlgmr.msra.gmra.mrb[0].mxu0 %vm323_vm0, %v4176_v37  ;;  %3285 = vmatmul.mubr.msk.f32.vlgmr.msra.gmra.mrb[0].mxu1 %vm323_vm0, %v4176_v37 }
 0x1eb   : > { %3487 = vmatpush3.bf16.msra.mxu0 %v3486_v36  ;;  %3295 = vmatprep.mubr.msk.f32.mxu0 %vm3881_vm1, %v3882_v18 }
 0x1ec   : > { %3488 = vmatprep.subr.bf16.mxu0 %v3880_v10  ;;  %3300 = vmatprep.mubr.msk.f32.mxu1 %vm3881_vm1, %v3882_v18 }
 0x1ef   : > { %3490 = vmatpush3.bf16.msra.mxu0 %v3489_v40 }
 0x1f0   : > { %3308 = vmatprep.subr.mxu0 %v3882_v18 }
 0x1f2   : > { %3296 = vmatmul.mubr.msk.f32.vlgmr.msra.gmra.mrb[2].mxu0 %vm323_vm0, %v4176_v37 }
 0x1f3   : > { %3310 = vmatprep.mubr.msk.f32.mxu0 %vm3881_vm1, %v3882_v18  ;;  %3309 = vmatpush3.msra.mxu0 %v588_v8 }
 0x1f4   : > { %3318 = vmatprep.subr.mxu0 %v3882_v18 }
 0x2bd   : > { %v425_v45 = vpop.f32.mrb[0].mxu0  ;;  %v504_v46 = vpop.f32.mrb[0].mxu1 }
 0x2be   : > { %v4200_v47 = vadd.f32 %v504_v46, %v437_v43  ;;  %v3275_v48 = vpop.f32.mrb[1].mxu0  ;;  %v3286_v49 = vpop.f32.mrb[1].mxu1  ;;  %v4208_v51 = vadd.f32 %v425_v45, %v355_v44 }
 0x2c0   : > { %836 = vrot.lane.b32.xlu0 %v4200_v47, %s3883_s24  ;;  %3299 = vmatpush3.xpose.msk.msra.mxu1 %vm592_vm2, %v4200_v47 }
 0x2c1   : > { %3303 = vmatprep.subr.mxu1 %v3882_v18 }
 0x2c3   : > { %3301 = vmatmul.mubr.msk.f32.vlgmr.msra.gmra.mrb[2].mxu1 %vm592_vm2, %v4208_v51 }
 0x2c4   : > { %3305 = vmatprep.mubr.msk.f32.mxu1 %vm3881_vm1, %v3882_v18 }
 0x2c5   : > { %v583_v53 = vpop.f32.mrb[2].mxu0 }
 0x2c6   : > { %v4216_v54 = vadd.f32 %v583_v53, %v516_v52  ;;  %v3297_v55 = vpop.f32.mrb[3].mxu0  ;;  %v832_v53 = vrot.slane %v4202_v50, %v345_v28 }
 0x2c8   : > { %3304 = vmatpush3.msra.mxu1 %v4216_v54 }
 0x2c9   : > { %3313 = vmatprep.subr.mxu1 %v3882_v18 }
 0x332   : > { %v837_v6 = vpop.permute.xlu0 %836 }
 0x396   : > { %v665_v57 = vpop.f32.mrb[2].mxu1 }
 0x397   : > { %v669_v58 = vmul.f32 0.35355338, %v665_v57  ;;  %v3302_v59 = vpop.f32.mrb[3].mxu1 }
 0x399   : > { %v671_v60 = vsel %vm670_vm3, -1e+30, %v669_v58 }
 0x39a   : > { %v672_v61 = vsel %vm592_vm2, %v671_v60, -inf }
 0x39b   : > { %673 = vmax.xlane.f32.xlu1 %v672_v61 }
 0x428   : > { %v674_v62 = vpop.xlane.xlu1 %673 }
 0x429   : > { %v675_v63 = vsub.f32 %v671_v60, %v674_v62 }
 0x42b   : > { %v676_v0 = vmul.f32 1.442695, %v675_v63  ;;  %v590_v63 = vld [vmem:[#allocation8 + $0x70] sm:$0xff] }
 0x42d   : > { %3613 = vpow2.f32 %v676_v0 }
 0x437   : > { %v3614_v1 = vpop.eup %3613 }
 0x438   : > { %v678_v2 = vsel %vm592_vm2, %v3614_v1, 0.0 }
 0x439   : > { %679 = vadd.xlane.f32.xlu1 %v678_v2 }
 0x44a   : > { %834 = vrot.lane.b32.xlu1 %v4208_v51, %s3883_s24 }
 0x4c6   : > { %v680_v3 = vpop.xlane.xlu1 %679 }
 0x4c7   : > { %3615 = vrcp.f32 %v680_v3 }
 0x4ca   : > { %v835_v7 = vpop.permute.xlu1 %834 }
 0x4d1   : > { %v3616_v4 = vpop.eup %3615 }
 0x4d2   : > { %v682_v5 = vmul.f32 %v3616_v4, %v3614_v1 }
 0x4d4   : > { %3306 = vmatmul.mubr.msk.f32.vlgmr.msra.gmra.mrb[4].mxu1 %vm592_vm2, %v682_v5 }
 0x4d5   : > { %3314 = vmatpush3.xpose.msk.msra.mxu1 %vm592_vm2, %v837_v6  ;;  %3315 = vmatprep.mubr.msk.f32.mxu1 %vm3881_vm1, %v3882_v18 }
 0x4d6   : > { %3323 = vmatprep.subr.mxu1 %v3882_v18 }
 0x4d8   : > { %3316 = vmatmul.mubr.msk.f32.vlgmr.msra.gmra.mrb[6].mxu1 %vm592_vm2, %v835_v7 }
 0x4d9   : > { %3325 = vmatprep.mubr.msk.f32.mxu1 %vm3881_vm1, %v3882_v18  ;;  %3324 = vmatpush3.msra.mxu1 %v589_v34 }
 0x4da   : > { %3333 = vmatprep.subr.mxu1 %v3882_v18 }
 0x5a7   : > { %v752_v9 = vpop.f32.mrb[4].mxu1 }
 0x5a8   : > { %v3307_v11 = vpop.f32.mrb[5].mxu1  ;;  %3311 = vmatmul.mubr.msk.f32.vlgmr.msra.gmra.mrb[4].mxu0 %vm592_vm2, %v752_v9 }
 0x5a9   : > { %3320 = vmatprep.mubr.msk.f32.mxu0 %vm3881_vm1, %v3882_v18 }
 0x5ab   : > { %v908_v12 = vpop.f32.mrb[6].mxu1 }
 0x5ac   : > { %v912_v13 = vmul.f32 0.35355338, %v908_v12  ;;  %v3317_v14 = vpop.f32.mrb[7].mxu1 }
 0x5ae   : > { %v913_v15 = vsel %vm670_vm3, -1e+30, %v912_v13 }
 0x5af   : > { %v914_v16 = vsel %vm592_vm2, %v913_v15, -inf }
 0x5b0   : > { %915 = vmax.xlane.f32.xlu1 %v914_v16 }
 0x5c1   : > { %1078 = vrot.lane.b32.xlu1 %v4200_v47, %s3884_s6 }
 0x5c5   : > { %1076 = vrot.lane.b32.xlu1 %v4208_v51, %s3884_s6 }
 0x63d   : > { %v916_v17 = vpop.xlane.xlu1 %915 }
 0x63e   : > { %v917_v19 = vsub.f32 %v913_v15, %v916_v17 }
 0x640   : > { %v918_v20 = vmul.f32 1.442695, %v917_v19 }
 0x641   : > { %v1079_v31 = vpop.permute.xlu1 %1078 }
 0x642   : > { %3617 = vpow2.f32 %v918_v20 }
 0x645   : > { %v1077_v33 = vpop.permute.xlu1 %1076 }
 0x64c   : > { %v3618_v21 = vpop.eup %3617 }
 0x64d   : > { %v920_v22 = vsel %vm592_vm2, %v3618_v21, 0.0 }
 0x64e   : > { %921 = vadd.xlane.f32.xlu0 %v920_v22 }
 0x664   : > { %926 = vrot.lane.b32.xlu0 %v4216_v54, %s3883_s24 }
 0x67b   : > { %v825_v23 = vpop.f32.mrb[4].mxu0 }
 0x67c   : > { %v3312_v24 = vpop.f32.mrb[5].mxu0  ;;  %v833_v55 = vadd.f32 %v832_v53, %v825_v23 }
 0x6db   : > { %v922_v26 = vpop.xlane.xlu0 %921 }
 0x6dc   : > { %3619 = vrcp.f32 %v922_v26 }
 0x6df   : > { %v927_v29 = vpop.permute.xlu0 %926 }
 0x6e0   : > { %3319 = vmatpush3.msra.mxu0 %v927_v29 }
 0x6e1   : > { %3328 = vmatprep.subr.mxu0 %v3882_v18 }
 0x6e6   : > { %v3620_v30 = vpop.eup %3619 }
 0x6e7   : > { %v924_v32 = vmul.f32 %v3620_v30, %v3618_v21 }
 0x6e9   : > { %3321 = vmatmul.mubr.msk.f32.vlgmr.msra.gmra.mrb[6].mxu0 %vm592_vm2, %v924_v32 }
 0x6ea   : > { %3329 = vmatpush3.xpose.msk.msra.mxu0 %vm592_vm2, %v1079_v31  ;;  %3330 = vmatprep.mubr.msk.f32.mxu0 %vm3881_vm1, %v3882_v18 }
 0x6eb   : > { %3338 = vmatprep.subr.mxu0 %v3882_v18 }
 0x6ed   : > { %3331 = vmatmul.mubr.msk.f32.vlgmr.msra.gmra.mrb[8].mxu0 %vm592_vm2, %v1077_v33 }
 0x6ee   : > { %3340 = vmatprep.mubr.msk.f32.mxu0 %vm3881_vm1, %v3882_v18  ;;  %3339 = vmatpush3.msra.mxu0 %v590_v63 }
 0x6ef   : > { %3348 = vmatprep.subr.mxu0 %v3882_v18 }
 0x7bc   : > { %v998_v35 = vpop.f32.mrb[6].mxu0 }
 0x7bd   : > { %v3322_v36 = vpop.f32.mrb[7].mxu0  ;;  %3326 = vmatmul.mubr.msk.f32.vlgmr.msra.gmra.mrb[8].mxu1 %vm592_vm2, %v998_v35  ;;  %v1665_v35 = vld [vmem:[#allocation8 + $0xa0] sm:$0xff] }
 0x7be   : > { %3335 = vmatprep.mubr.msk.f32.mxu1 %vm3881_vm1, %v3882_v18  ;;  %v1666_v36 = vld [vmem:[#allocation8 + $0xa8] sm:$0xff] }
 0x7c0   : > { %v1150_v38 = vpop.f32.mrb[8].mxu0 }
 0x7c1   : > { %v1154_v39 = vmul.f32 0.35355338, %v1150_v38  ;;  %v3332_v40 = vpop.f32.mrb[9].mxu0  ;;  %v3498_v38 = vpack.c.bf16 %v1666_v36, %v1665_v35  ;;  %v1826_v35 = vld [vmem:[#allocation8 + $0xe0] sm:$0xff] }
 0x7c2   : > { %v1584_v40 = vld [vmem:[#allocation8 + $0x88] sm:$0xff] }
 0x7c3   : > { %v1155_v43 = vsel %vm670_vm3, -1e+30, %v1154_v39  ;;  %v1583_v39 = vld [vmem:[#allocation8 + $0x80] sm:$0xff] }
 0x7c4   : > { %v1156_v44 = vsel %vm592_vm2, %v1155_v43, -inf }
 0x7c5   : > { %1157 = vmax.xlane.f32.xlu1 %v1156_v44  ;;  %v1668_v44 = vld [vmem:[#allocation8 + $0xb8] sm:$0xff] }
 0x7d6   : > { %1319 = vrot.lane.b32.xlu1 %v4200_v47, %s3885_s15 }
 0x7da   : > { %1317 = vrot.lane.b32.xlu1 %v4208_v51, %s3885_s15 }
 0x852   : > { %v1158_v45 = vpop.xlane.xlu1 %1157 }
 0x853   : > { %v1159_v46 = vsub.f32 %v1155_v43, %v1158_v45  ;;  %v3492_v43 = vpack.c.bf16 %v1584_v40, %v1583_v39 }
 0x855   : > { %v1160_v48 = vmul.f32 1.442695, %v1159_v46  ;;  %v1585_v46 = vld [vmem:[#allocation8 + $0x90] sm:$0xff] }
 0x856   : > { %v1320_v61 = vpop.permute.xlu1 %1319 }
 0x857   : > { %3621 = vpow2.f32 %v1160_v48  ;;  %v1586_v48 = vld [vmem:[#allocation8 + $0x98] sm:$0xff] }
 0x85a   : > { %v1318_v28 = vpop.permute.xlu1 %1317 }
 0x861   : > { %v3622_v49 = vpop.eup %3621 }
 0x862   : > { %v1162_v52 = vsel %vm592_vm2, %v3622_v49, 0.0 }
 0x863   : > { %1163 = vadd.xlane.f32.xlu0 %v1162_v52  ;;  %v3495_v52 = vpack.c.bf16 %v1586_v48, %v1585_v46 }
 0x879   : > { %1167 = vrot.lane.b32.xlu0 %v4216_v54, %s3884_s6 }
 0x890   : > { %v1071_v47 = vpop.f32.mrb[8].mxu1 }
 0x891   : > { %v1075_v57 = vadd.f32 %v1071_v47, %v833_v55  ;;  %v3327_v58 = vpop.f32.mrb[9].mxu1 }
 0x892   : > { %v1579_v58 = vsub.s32 3, %v4166_v25 }
 0x894   : > { %v1672_v63 = vrot.slane %v4202_v50, %v1579_v58 }
 0x8f0   : > { %v1164_v51 = vpop.xlane.xlu0 %1163 }
 0x8f1   : > { %3623 = vrcp.f32 %v1164_v51 }
 0x8f4   : > { %v1168_v59 = vpop.permute.xlu0 %1167 }
 0x8f5   : > { %3334 = vmatpush3.msra.mxu1 %v1168_v59 }
 0x8f6   : > { %3343 = vmatprep.subr.mxu1 %v3882_v18 }
 0x8fb   : > { %v3624_v60 = vpop.eup %3623 }
 0x8fc   : > { %v1166_v62 = vmul.f32 %v3624_v60, %v3622_v49  ;;  %v319_v49 = vld [vmem:[%s274_s28] sm:$0xff] }
 0x8fe   : > { %3336 = vmatmul.mubr.msk.f32.vlgmr.msra.gmra.mrb[10].mxu1 %vm592_vm2, %v1166_v62 }
 0x8ff   : > { %3344 = vmatpush3.xpose.msk.msra.mxu1 %vm592_vm2, %v1320_v61  ;;  %3345 = vmatprep.mubr.msk.f32.mxu1 %vm3881_vm1, %v3882_v18  ;;  %v1580_v61 = vrot.slane %v4169_v27, %v1579_v58 }
 0x900   : > { %3353 = vmatprep.subr.mxu1 %v3882_v18 }
 0x902   : > { %3346 = vmatmul.mubr.msk.f32.vlgmr.msra.gmra.mrb[12].mxu1 %vm592_vm2, %v1318_v28 }
 0x903   : > { %3355 = vmatprep.mubr.msk.f32.mxu1 %vm3881_vm1, %v3882_v18  ;;  %3354 = vmatpush3.msra.mxu1 %v591_v56 }
 0x904   : > { %3497 = vmatprep.subr.bf16.mxu1 %v3880_v10 }
 0x9d1   : > { %v1239_v0 = vpop.f32.mrb[10].mxu1 }
 0x9d2   : > { %v3337_v1 = vpop.f32.mrb[11].mxu1  ;;  %3341 = vmatmul.mubr.msk.f32.vlgmr.msra.gmra.mrb[10].mxu0 %vm592_vm2, %v1239_v0 }
 0x9d3   : > { %3350 = vmatprep.mubr.msk.f32.mxu0 %vm3881_vm1, %v3882_v18 }
 0x9d5   : > { %v1391_v2 = vpop.f32.mrb[12].mxu1 }
 0x9d6   : > { %v1395_v3 = vmul.f32 0.35355338, %v1391_v2  ;;  %v3347_v4 = vpop.f32.mrb[13].mxu1 }
 0x9d8   : > { %v1396_v5 = vsel %vm670_vm3, -1e+30, %v1395_v3 }
 0x9d9   : > { %v1397_v6 = vsel %vm592_vm2, %v1396_v5, -inf }
 0x9da   : > { %1398 = vmax.xlane.f32.xlu0 %v1397_v6 }
 0x9f0   : > { %1408 = vrot.lane.b32.xlu0 %v4216_v54, %s3885_s15 }
 0xa67   : > { %v1399_v7 = vpop.xlane.xlu0 %1398 }
 0xa68   : > { %v1400_v8 = vsub.f32 %v1396_v5, %v1399_v7  ;;  %v1747_v7 = vld [vmem:[#allocation8 + $0xc0] sm:$0xff] }
 0xa6a   : > { %v1401_v9 = vmul.f32 1.442695, %v1400_v8  ;;  %v1748_v8 = vld [vmem:[#allocation8 + $0xc8] sm:$0xff] }
 0xa6b   : > { %v1409_v11 = vpop.permute.xlu0 %1408 }
 0xa6c   : > { %3625 = vpow2.f32 %v1401_v9  ;;  %3349 = vmatpush3.msra.mxu0 %v1409_v11  ;;  %v1749_v9 = vld [vmem:[#allocation8 + $0xd0] sm:$0xff]  ;;  %v3504_v11 = vpack.c.bf16 %v1748_v8, %v1747_v7 }
 0xa6d   : > { %3491 = vmatprep.subr.bf16.mxu0 %v3880_v10 }
 0xa76   : > { %v3626_v12 = vpop.eup %3625 }
 0xa77   : > { %v1403_v13 = vsel %vm592_vm2, %v3626_v12, 0.0 }
 0xa78   : > { %1404 = vadd.xlane.f32.xlu1 %v1403_v13 }
 0xaa5   : > { %v1312_v14 = vpop.f32.mrb[10].mxu0 }
 0xaa6   : > { %v1316_v15 = vadd.f32 %v1312_v14, %v1075_v57  ;;  %v3342_v16 = vpop.f32.mrb[11].mxu0  ;;  %v1574_v57 = vsub.s32 2, %v4166_v25 }
 0xaa8   : > { %v1575_v51 = vrot.slane %v4169_v27, %v1574_v57  ;;  %v1590_v3 = vrot.slane %v4202_v50, %v1574_v57 }
 0xb05   : > { %v1405_v54 = vpop.xlane.xlu1 %1404 }
 0xb06   : > { %3627 = vrcp.f32 %v1405_v54 }
 0xb10   : > { %v3628_v17 = vpop.eup %3627 }
 0xb11   : > { %v1407_v19 = vmul.f32 %v3628_v17, %v3626_v12  ;;  %v1750_v12 = vld [vmem:[#allocation8 + $0xd8] sm:$0xff] }
 0xb12   : > { %v3507_v13 = vpack.c.bf16 %v1750_v12, %v1749_v9  ;;  %v2066_v12 = vsub.s32 5, %v4166_v25 }
 0xb13   : > { %3351 = vmatmul.mubr.msk.f32.vlgmr.msra.gmra.mrb[12].mxu0 %vm592_vm2, %v1407_v19 }
 0xb14   : > { %3366 = vmatprep.mubr.msk.f32.mxu0 %vm3881_vm1, %v3882_v18  ;;  %3493 = vmatpush3.bf16.msra.mxu0 %v3492_v43 }
 0xb15   : > { %3494 = vmatprep.subr.bf16.mxu0 %v3880_v10 }
 0xb18   : > { %3496 = vmatpush3.bf16.msra.mxu0 %v3495_v52 }
 0xb19   : > { %3503 = vmatprep.subr.bf16.mxu0 %v3880_v10 }
 0xbe6   : > { %v1480_v20 = vpop.f32.mrb[12].mxu0 }
 0xbe7   : > { %v3352_v21 = vpop.f32.mrb[13].mxu0  ;;  %3356 = vmatmul.mubr.msk.f32.vlgmr.msra.gmra.mrb[14].mxu1 %vm592_vm2, %v1480_v20 }
 0xbe8   : > { %3377 = vmatprep.mubr.msk.f32.mxu1 %vm3881_vm1, %v3882_v18  ;;  %3499 = vmatpush3.bf16.msra.mxu1 %v3498_v38 }
 0xbe9   : > { %3500 = vmatprep.subr.bf16.mxu1 %v3880_v10 }
 0xcba   : > { %v1553_v22 = vpop.f32.mrb[14].mxu1 }
 0xcbb   : > { %v1557_v23 = vadd.f32 %v1553_v22, %v1316_v15  ;;  %v3357_v24 = vpop.f32.mrb[15].mxu1  ;;  %v1753_v22 = vsub.s32 4, %v4166_v25 }
 0xcbd   : > { %v1558_v26 = vadd.f32 %v1557_v23, %v4176_v37  ;;  %v1667_v37 = vld [vmem:[#allocation8 + $0xb0] sm:$0xff]  ;;  %v1754_v23 = vrot.slane %v4202_v50, %v1753_v22 }
 0xcbe   : > { %v3501_v45 = vpack.c.bf16 %v1668_v44, %v1667_v37 }
 0xcbf   : > { %v1559_v29 = vsel %vm323_vm0, %v1558_v26, 0.0 }
 0xcc0   : > { %1560 = vadd.xlane.f32.xlu1 %v1559_v29  ;;  %3502 = vmatpush3.bf16.msra.mxu1 %v3501_v45 }
 0xcc1   : > { %3391 = vmatprep.subr.mxu1 %v3882_v18 }
 0xcc3   : > { %3378 = vmatmul.mubr.msk.f32.vlgmr.msra.gmra.mrb[16].mxu1 %vm323_vm0, %v319_v49 }
 0xcc4   : > { %3393 = vmatprep.mubr.msk.f32.mxu1 %vm3881_vm1, %v3882_v18 }
 0xd4d   : > { %v1561_v30 = vpop.xlane.xlu1 %1560 }
 0xd4e   : > { %v1562_v31 = vmul.f32 0.03125, %v1561_v30 }
 0xd50   : > { %v1563_v32 = vsub.f32 %v1558_v26, %v1562_v31 }
 0xd52   : > { %v1564_v33 = vmul.f32 %v1563_v32, %v1563_v32 }
 0xd54   : > { %v1565_v34 = vsel %vm323_vm0, %v1564_v33, 0.0 }
 0xd55   : > { %1566 = vadd.xlane.f32.xlu1 %v1565_v34 }
 0xd96   : > { %v1742_v0 = vpop.f32.mrb[16].mxu1 }
 0xd97   : > { %v4327_v1 = vadd.f32 %v1742_v0, %v1672_v63  ;;  %v3379_v2 = vpop.f32.mrb[17].mxu1 }
 0xd99   : > { %2071 = vrot.lane.b32.xlu0 %v4327_v1, %s3883_s24  ;;  %3392 = vmatpush3.xpose.msk.msra.mxu1 %vm592_vm2, %v4327_v1 }
 0xd9a   : > { %3396 = vmatprep.subr.mxu1 %v3882_v18 }
 0xde2   : > { %v1567_v53 = vpop.xlane.xlu1 %1566 }
 0xde3   : > { %v1568_v55 = vmul.f32 0.03125, %v1567_v53 }
 0xde5   : > { %v1569_v47 = vadd.f32 1e-05, %v1568_v55 }
 0xde7   : > { %3629 = vrsqrt.f32 %v1569_v47 }
 0xdf1   : > { %v3630_v59 = vpop.eup %3629 }
 0xdf2   : > { %v1571_v60 = vmul.f32 %v3630_v59, %v1563_v32 }
 0xdf4   : > { %v1576_v62 = vmul.f32 %v1575_v51, %v1571_v60  ;;  %v1827_v60 = vld [vmem:[#allocation8 + $0xe8] sm:$0xff] }
 0xdf6   : > { %v4320_v28 = vadd.f32 %v1580_v61, %v1576_v62 }
 0xdf8   : > { %3367 = vmatmul.mubr.msk.f32.vlgmr.msra.gmra.mrb[14].mxu0 %vm323_vm0, %v4320_v28 }
 0xdf9   : > { %3388 = vmatprep.mubr.msk.f32.mxu0 %vm3881_vm1, %v3882_v18  ;;  %3505 = vmatpush3.bf16.msra.mxu0 %v3504_v11 }
 0xdfa   : > { %3506 = vmatprep.subr.bf16.mxu0 %v3880_v10 }
 0xdfd   : > { %3508 = vmatpush3.bf16.msra.mxu0 %v3507_v13 }
 0xdfe   : > { %3401 = vmatprep.subr.mxu0 %v3882_v18 }
 0xe00   : > { %3389 = vmatmul.mubr.msk.f32.vlgmr.msra.gmra.mrb[16].mxu0 %vm323_vm0, %v319_v49 }
 0xe01   : > { %3403 = vmatprep.mubr.msk.f32.mxu0 %vm3881_vm1, %v3882_v18  ;;  %3402 = vmatpush3.msra.mxu0 %v1826_v35 }
 0xe02   : > { %3411 = vmatprep.subr.mxu0 %v3882_v18 }
 0xe0b   : > { %v2072_v33 = vpop.permute.xlu0 %2071 }
 0xecb   : > { %v1660_v4 = vpop.f32.mrb[14].mxu0 }
 0xecc   : > { %v4335_v5 = vadd.f32 %v1660_v4, %v1590_v3  ;;  %v3368_v6 = vpop.f32.mrb[15].mxu0 }
 0xece   : > { %3394 = vmatmul.mubr.msk.f32.vlgmr.msra.gmra.mrb[18].mxu1 %vm592_vm2, %v4335_v5 }
 0xecf   : > { %3398 = vmatprep.mubr.msk.f32.mxu1 %vm3881_vm1, %v3882_v18 }
 0xed3   : > { %v1821_v24 = vpop.f32.mrb[16].mxu0 }
 0xed4   : > { %v4354_v26 = vadd.f32 %v1821_v24, %v1754_v23  ;;  %v3390_v29 = vpop.f32.mrb[17].mxu0 }
 0xed6   : > { %3397 = vmatpush3.msra.mxu1 %v4354_v26 }
 0xed7   : > { %3406 = vmatprep.subr.mxu1 %v3882_v18 }
 0xfa1   : > { %v1902_v56 = vpop.f32.mrb[18].mxu1 }
 0xfa2   : > { %v1906_v14 = vmul.f32 0.35355338, %v1902_v56  ;;  %v3395_v15 = vpop.f32.mrb[19].mxu1 }
 0xfa4   : > { %v1907_v16 = vsel %vm592_vm2, %v1906_v14, -inf }
 0xfa5   : > { %1908 = vmax.xlane.f32.xlu1 %v1907_v16 }
0x1032   : > { %v1909_v54 = vpop.xlane.xlu1 %1908 }
0x1033   : > { %v1910_v17 = vsub.f32 %v1906_v14, %v1909_v54 }
0x1035   : > { %v1911_v19 = vmul.f32 1.442695, %v1910_v17 }
0x1037   : > { %3631 = vpow2.f32 %v1911_v19 }
0x1041   : > { %v3632_v20 = vpop.eup %3631 }
0x1042   : > { %v1913_v21 = vsel %vm592_vm2, %v3632_v20, 0.0 }
0x1043   : > { %1914 = vadd.xlane.f32.xlu1 %v1913_v21 }
0x1054   : > { %2069 = vrot.lane.b32.xlu1 %v4335_v5, %s3883_s24 }
0x10d0   : > { %v1915_v30 = vpop.xlane.xlu1 %1914 }
0x10d1   : > { %3633 = vrcp.f32 %v1915_v30 }
0x10d4   : > { %v2070_v34 = vpop.permute.xlu1 %2069 }
0x10db   : > { %v3634_v31 = vpop.eup %3633 }
0x10dc   : > { %v1917_v32 = vmul.f32 %v3634_v31, %v3632_v20  ;;  %v1828_v20 = vld [vmem:[#allocation8 + $0xf0] sm:$0xff] }
0x10de   : > { %3399 = vmatmul.mubr.msk.f32.vlgmr.msra.gmra.mrb[20].mxu1 %vm592_vm2, %v1917_v32 }
0x10df   : > { %3407 = vmatpush3.xpose.msk.msra.mxu1 %vm592_vm2, %v2072_v33  ;;  %3408 = vmatprep.mubr.msk.f32.mxu1 %vm3881_vm1, %v3882_v18 }
0x10e0   : > { %3416 = vmatprep.subr.mxu1 %v3882_v18 }
0x10e2   : > { %3409 = vmatmul.mubr.msk.f32.vlgmr.msra.gmra.mrb[22].mxu1 %vm592_vm2, %v2070_v34 }
0x10e3   : > { %3418 = vmatprep.mubr.msk.f32.mxu1 %vm3881_vm1, %v3882_v18  ;;  %3417 = vmatpush3.msra.mxu1 %v1827_v60 }
0x10e4   : > { %3426 = vmatprep.subr.mxu1 %v3882_v18 }
0x11b1   : > { %v1987_v36 = vpop.f32.mrb[20].mxu1 }
0x11b2   : > { %v3400_v38 = vpop.f32.mrb[21].mxu1  ;;  %3404 = vmatmul.mubr.msk.f32.vlgmr.msra.gmra.mrb[18].mxu0 %vm592_vm2, %v1987_v36 }
0x11b3   : > { %3413 = vmatprep.mubr.msk.f32.mxu0 %vm3881_vm1, %v3882_v18 }
0x11b5   : > { %v2143_v39 = vpop.f32.mrb[22].mxu1 }
0x11b6   : > { %v2147_v40 = vmul.f32 0.35355338, %v2143_v39  ;;  %v3410_v37 = vpop.f32.mrb[23].mxu1  ;;  %v1829_v39 = vld [vmem:[#allocation8 + $0xf8] sm:$0xff] }
0x11b8   : > { %v2148_v43 = vsel %vm592_vm2, %v2147_v40, -inf }
0x11b9   : > { %2149 = vmax.xlane.f32.xlu0 %v2148_v43 }
0x11cf   : > { %2160 = vrot.lane.b32.xlu0 %v4354_v26, %s3883_s24 }
0x11d3   : > { %2310 = vrot.lane.b32.xlu0 %v4335_v5, %s3884_s6 }
0x1246   : > { %v2150_v44 = vpop.xlane.xlu0 %2149 }
0x1247   : > { %v2151_v45 = vsub.f32 %v2147_v40, %v2150_v44 }
0x1249   : > { %v2152_v46 = vmul.f32 1.442695, %v2151_v45 }
0x124a   : > { %v2161_v48 = vpop.permute.xlu0 %2160 }
0x124b   : > { %3635 = vpow2.f32 %v2152_v46  ;;  %3412 = vmatpush3.msra.mxu0 %v2161_v48 }
0x124c   : > { %3421 = vmatprep.subr.mxu0 %v3882_v18 }
0x124e   : > { %v2311_v59 = vpop.permute.xlu0 %2310 }
0x1255   : > { %v3636_v49 = vpop.eup %3635 }
0x1256   : > { %v2154_v52 = vsel %vm592_vm2, %v3636_v49, 0.0 }
0x1257   : > { %2155 = vadd.xlane.f32.xlu1 %v2154_v52 }
0x1268   : > { %2312 = vrot.lane.b32.xlu1 %v4327_v1, %s3884_s6 }
0x1285   : > { %v2060_v53 = vpop.f32.mrb[18].mxu0 }
0x1286   : > { %v3405_v55 = vpop.f32.mrb[19].mxu0 }
0x12e4   : > { %v2156_v47 = vpop.xlane.xlu1 %2155 }
0x12e5   : > { %3637 = vrcp.f32 %v2156_v47 }
0x12e8   : > { %v2313_v51 = vpop.permute.xlu1 %2312 }
0x12ef   : > { %v3638_v57 = vpop.eup %3637 }
0x12f0   : > { %v2158_v58 = vmul.f32 %v3638_v57, %v3636_v49 }
0x12f2   : > { %3414 = vmatmul.mubr.msk.f32.vlgmr.msra.gmra.mrb[20].mxu0 %vm592_vm2, %v2158_v58 }
0x12f3   : > { %3422 = vmatpush3.xpose.msk.msra.mxu0 %vm592_vm2, %v2313_v51  ;;  %3423 = vmatprep.mubr.msk.f32.mxu0 %vm3881_vm1, %v3882_v18 }
0x12f4   : > { %3431 = vmatprep.subr.mxu0 %v3882_v18 }
0x12f6   : > { %3424 = vmatmul.mubr.msk.f32.vlgmr.msra.gmra.mrb[22].mxu0 %vm592_vm2, %v2311_v59 }
0x12f7   : > { %3433 = vmatprep.mubr.msk.f32.mxu0 %vm3881_vm1, %v3882_v18  ;;  %3432 = vmatpush3.msra.mxu0 %v1828_v20 }
0x12f8   : > { %3441 = vmatprep.subr.mxu0 %v3882_v18 }
0x13c5   : > { %v2232_v61 = vpop.f32.mrb[20].mxu0 }
0x13c6   : > { %v3415_v62 = vpop.f32.mrb[21].mxu0  ;;  %3419 = vmatmul.mubr.msk.f32.vlgmr.msra.gmra.mrb[24].mxu1 %vm592_vm2, %v2232_v61  ;;  %v2815_v61 = vld [vmem:[#allocation8 + $0x100] sm:$0xff] }
0x13c7   : > { %3428 = vmatprep.mubr.msk.f32.mxu1 %vm3881_vm1, %v3882_v18  ;;  %v2816_v62 = vld [vmem:[#allocation8 + $0x108] sm:$0xff] }
0x13c9   : > { %v2384_v63 = vpop.f32.mrb[22].mxu0 }
0x13ca   : > { %v2388_v0 = vmul.f32 0.35355338, %v2384_v63  ;;  %v3425_v2 = vpop.f32.mrb[23].mxu0  ;;  %v3510_v63 = vpack.c.bf16 %v2816_v62, %v2815_v61 }
0x13cc   : > { %v2389_v3 = vsel %vm592_vm2, %v2388_v0, -inf }
0x13cd   : > { %2390 = vmax.xlane.f32.xlu0 %v2389_v3  ;;  %v2899_v3 = vld [vmem:[#allocation8 + $0x128] sm:$0xff] }
0x13e3   : > { %2400 = vrot.lane.b32.xlu0 %v4354_v26, %s3884_s6 }
0x13e7   : > { %2550 = vrot.lane.b32.xlu0 %v4335_v5, %s3885_s15  ;;  %v2067_v5 = vrot.slane %v4202_v50, %v2066_v12 }
0x13e9   : > { %v2068_v13 = vadd.f32 %v2067_v5, %v2060_v53  ;;  %v2812_v5 = vrot.slane %v4169_v27, %v2066_v12  ;;  %v2905_v12 = vrot.slane %v4202_v50, %v436_v41 }
0x145a   : > { %v2391_v4 = vpop.xlane.xlu0 %2390 }
0x145b   : > { %v2392_v6 = vsub.f32 %v2388_v0, %v2391_v4  ;;  %v2818_v0 = vld [vmem:[#allocation8 + $0x118] sm:$0xff] }
0x145d   : > { %v2393_v7 = vmul.f32 1.442695, %v2392_v6 }
0x145e   : > { %v2401_v8 = vpop.permute.xlu0 %2400 }
0x145f   : > { %3639 = vpow2.f32 %v2393_v7  ;;  %3427 = vmatpush3.msra.mxu1 %v2401_v8 }
0x1460   : > { %3436 = vmatprep.subr.mxu1 %v3882_v18 }
0x1469   : > { %v3640_v9 = vpop.eup %3639 }
0x146a   : > { %v2395_v11 = vsel %vm592_vm2, %v3640_v9, 0.0 }
0x146b   : > { %2396 = vadd.xlane.f32.xlu1 %v2395_v11 }
0x147c   : > { %2552 = vrot.lane.b32.xlu1 %v4327_v1, %s3885_s15  ;;  %v2551_v1 = vpop.permute.xlu0 %2550 }
0x1499   : > { %v2305_v56 = vpop.f32.mrb[24].mxu1 }
0x149a   : > { %v2309_v14 = vadd.f32 %v2305_v56, %v2068_v13  ;;  %v3420_v15 = vpop.f32.mrb[25].mxu1 }
0x149b   : > { %v2901_v15 = vld [vmem:[#allocation8 + $0x138] sm:$0xff] }
0x14f8   : > { %v2397_v16 = vpop.xlane.xlu1 %2396 }
0x14f9   : > { %3641 = vrcp.f32 %v2397_v16 }
0x14fc   : > { %v2553_v19 = vpop.permute.xlu1 %2552 }
0x1503   : > { %v3642_v54 = vpop.eup %3641 }
0x1504   : > { %v2399_v17 = vmul.f32 %v3642_v54, %v3640_v9  ;;  %v2807_v9 = vrot.slane %v4169_v27, %v1753_v22  ;;  %v2822_v22 = vrot.slane %v4202_v50, %v354_v42 }
0x1506   : > { %3429 = vmatmul.mubr.msk.f32.vlgmr.msra.gmra.mrb[26].mxu1 %vm592_vm2, %v2399_v17 }
0x1507   : > { %3437 = vmatpush3.xpose.msk.msra.mxu1 %vm592_vm2, %v2553_v19  ;;  %3438 = vmatprep.mubr.msk.f32.mxu1 %vm3881_vm1, %v3882_v18 }
0x1508   : > { %3446 = vmatprep.subr.mxu1 %v3882_v18 }
0x150a   : > { %3439 = vmatmul.mubr.msk.f32.vlgmr.msra.gmra.mrb[28].mxu1 %vm592_vm2, %v2551_v1 }
0x150b   : > { %3448 = vmatprep.mubr.msk.f32.mxu1 %vm3881_vm1, %v3882_v18  ;;  %3447 = vmatpush3.msra.mxu1 %v1829_v39 }
0x150c   : > { %3515 = vmatprep.subr.bf16.mxu1 %v3880_v10 }
0x15d9   : > { %v2472_v21 = vpop.f32.mrb[26].mxu1 }
0x15da   : > { %v3430_v23 = vpop.f32.mrb[27].mxu1  ;;  %3434 = vmatmul.mubr.msk.f32.vlgmr.msra.gmra.mrb[24].mxu0 %vm592_vm2, %v2472_v21 }
0x15db   : > { %3443 = vmatprep.mubr.msk.f32.mxu0 %vm3881_vm1, %v3882_v18 }
0x15dd   : > { %v2624_v24 = vpop.f32.mrb[28].mxu1 }
0x15de   : > { %v2628_v29 = vmul.f32 0.35355338, %v2624_v24  ;;  %v3440_v30 = vpop.f32.mrb[29].mxu1 }
0x15e0   : > { %v2629_v31 = vsel %vm592_vm2, %v2628_v29, -inf }
0x15e1   : > { %2630 = vmax.xlane.f32.xlu0 %v2629_v31 }
0x15f7   : > { %2640 = vrot.lane.b32.xlu0 %v4354_v26, %s3885_s15 }
0x166e   : > { %v2631_v32 = vpop.xlane.xlu0 %2630 }
0x166f   : > { %v2632_v33 = vsub.f32 %v2628_v29, %v2631_v32 }
0x1671   : > { %v2633_v34 = vmul.f32 1.442695, %v2632_v33 }
0x1672   : > { %v2641_v35 = vpop.permute.xlu0 %2640 }
0x1673   : > { %3643 = vpow2.f32 %v2633_v34  ;;  %3442 = vmatpush3.msra.mxu0 %v2641_v35 }
0x1674   : > { %3509 = vmatprep.subr.bf16.mxu0 %v3880_v10 }
0x167d   : > { %v3644_v36 = vpop.eup %3643 }
0x167e   : > { %v2635_v38 = vsel %vm592_vm2, %v3644_v36, 0.0 }
0x167f   : > { %2636 = vadd.xlane.f32.xlu1 %v2635_v38 }
0x16ad   : > { %v2545_v40 = vpop.f32.mrb[24].mxu0 }
0x16ae   : > { %v2549_v37 = vadd.f32 %v2545_v40, %v2309_v14  ;;  %v3435_v43 = vpop.f32.mrb[25].mxu0 }
0x170c   : > { %v2637_v26 = vpop.xlane.xlu1 %2636 }
0x170d   : > { %3645 = vrcp.f32 %v2637_v26 }
0x1717   : > { %v3646_v44 = vpop.eup %3645 }
0x1718   : > { %v2639_v45 = vmul.f32 %v3646_v44, %v3644_v36 }
0x171a   : > { %3444 = vmatmul.mubr.msk.f32.vlgmr.msra.gmra.mrb[26].mxu0 %vm592_vm2, %v2639_v45 }
0x171b   : > { %3459 = vmatprep.mubr.msk.f32.mxu0 %vm3881_vm1, %v3882_v18  ;;  %3511 = vmatpush3.bf16.msra.mxu0 %v3510_v63 }
0x171c   : > { %3512 = vmatprep.subr.bf16.mxu0 %v3880_v10 }
0x17ed   : > { %v2712_v46 = vpop.f32.mrb[26].mxu0 }
0x17ee   : > { %v3445_v48 = vpop.f32.mrb[27].mxu0  ;;  %3449 = vmatmul.mubr.msk.f32.vlgmr.msra.gmra.mrb[30].mxu1 %vm592_vm2, %v2712_v46 }
0x17ef   : > { %3470 = vmatprep.mubr.msk.f32.mxu1 %vm3881_vm1, %v3882_v18  ;;  %v2817_v18 = vld [vmem:[#allocation8 + $0x110] sm:$0xff] }
0x17f0   : > { %v3513_v2 = vpack.c.bf16 %v2818_v0, %v2817_v18 }
0x17f2   : > { %3514 = vmatpush3.bf16.msra.mxu0 %v3513_v2 }
0x18c1   : > { %v2785_v49 = vpop.f32.mrb[30].mxu1 }
0x18c2   : > { %v2789_v52 = vadd.f32 %v2785_v49, %v2549_v37  ;;  %v3450_v53 = vpop.f32.mrb[31].mxu1 }
0x18c4   : > { %v2790_v55 = vadd.f32 %v2789_v52, %v4320_v28  ;;  %v2898_v28 = vld [vmem:[#allocation8 + $0x120] sm:$0xff] }
0x18c5   : > { %v3516_v4 = vpack.c.bf16 %v2899_v3, %v2898_v28 }
0x18c6   : > { %v2791_v47 = vsel %vm323_vm0, %v2790_v55, 0.0 }
0x18c7   : > { %2792 = vadd.xlane.f32.xlu1 %v2791_v47  ;;  %3517 = vmatpush3.bf16.msra.mxu1 %v3516_v4 }
0x18c8   : > { %3518 = vmatprep.subr.bf16.mxu1 %v3880_v10  ;;  %v2900_v10 = vld [vmem:[#allocation8 + $0x130] sm:$0xff] }
0x18c9   : > { %v3519_v16 = vpack.c.bf16 %v2901_v15, %v2900_v10 }
0x18cb   : > { %3520 = vmatpush3.bf16.msra.mxu1 %v3519_v16 }
0x1954   : > { %v2793_v57 = vpop.xlane.xlu1 %2792 }
0x1955   : > { %v2794_v58 = vmul.f32 0.03125, %v2793_v57 }
0x1957   : > { %v2795_v51 = vsub.f32 %v2790_v55, %v2794_v58 }
0x1959   : > { %v2796_v59 = vmul.f32 %v2795_v51, %v2795_v51 }
0x195b   : > { %v2797_v60 = vsel %vm323_vm0, %v2796_v59, 0.0 }
0x195c   : > { %2798 = vadd.xlane.f32.xlu1 %v2797_v60 }
0x19e9   : > { %v2799_v6 = vpop.xlane.xlu1 %2798 }
0x19ea   : > { %v2800_v7 = vmul.f32 0.03125, %v2799_v6 }
0x19ec   : > { %v2801_v8 = vadd.f32 1e-05, %v2800_v7 }
0x19ee   : > { %3647 = vrsqrt.f32 %v2801_v8 }
0x19f8   : > { %v3648_v11 = vpop.eup %3647 }
0x19f9   : > { %v2803_v13 = vmul.f32 %v3648_v11, %v2795_v51 }
0x19fb   : > { %v2808_v56 = vmul.f32 %v2807_v9, %v2803_v13 }
0x19fd   : > { %v2813_v14 = vadd.f32 %v2812_v5, %v2808_v56 }
0x19ff   : > { %3460 = vmatmul.mubr.msk.f32.vlgmr.msra.gmra.mrb[28].mxu0 %vm323_vm0, %v2813_v14 }
0x1ad2   : > { %v2892_v54 = vpop.f32.mrb[28].mxu0 }
0x1ad3   : > { %v2893_v17 = vadd.f32 %v2892_v54, %v2822_v22  ;;  %v3461_v19 = vpop.f32.mrb[29].mxu0 }
0x1ad5   : > { %v2896_v27 = vmax.f32 %v2893_v17, 0.0 }
0x1ad7   : > { %3471 = vmatmul.mubr.msk.f32.vlgmr.msra.gmra.mrb[32].mxu1 %vm323_vm0, %v2896_v27 }
0x1baa   : > { %v2975_v1 = vpop.f32.mrb[32].mxu1 }
0x1bab   : > { %v2976_v20 = vadd.f32 %v2975_v1, %v2905_v12  ;;  %v3472_v21 = vpop.f32.mrb[33].mxu1 }
0x1bad   : > { %v2979_v23 = vadd.f32 %v2976_v20, %v2813_v14 }
0x1baf   : > { %2980 = vst.msk [vmem:[%s317_s7] sm:$0xff] %vm323_vm0, %v2979_v23 }
0x1bb0   : > { %3806 = shalt.err (!%p3803_p2)
}
0x1bb1   : > { %s3807_s3 = scalar_lea.hbm %s4452_s9, 128  ;;  %s3811_s12 = scalar_lea.hbm %s4502_s5, 256 }
0x1bb2   : > { %p3808_p12 = scmp.ne.s32.totalorder %s4452_s9, %s3807_s3  ;;  %p3812_p0 = scmp.lt.u32.totalorder %s4452_s9, %s4502_s5 }
0x1bb3   : > { %p3813_p4 = scmp.lt.u32.totalorder %s3811_s12, %s3807_s3  ;;  %p3815_p3 = scmp.lt.u32.totalorder %s3807_s3, %s4452_s9 }
0x1bb4   : > { %p3809_p6 = pnand %p3808_p12, %p4525_p7 }
0x1bb5   : > { %p3814_p8 = por %p3813_p4, %p3812_p0 }
0x1bb6   : > { %p3810_p11 = pneg %p3809_p6 }
0x1bb7   : > { %p3816_p10 = por %p3815_p3, %p3814_p8 }
0x1bb9   : > { %p3817_p13 = pnand %p3816_p10, %p3810_p11 }
0x1bbb   : > { %3820 = shalt.err (!%p3817_p13)
}
0x1bbc   : > { %3537 = dma.vmem_to_hbm [thread:$0]  (%p4525_p7), %s4454_s13, 128, %s4452_s9, %s2982_s11  }
0x1bbd PF: > { %s3007_s6 = sand.u32 1, %s3859_s18   ;;  %p4526_p5 = scmp.ne.s32.totalorder %s4510_s25, 0 }
0x1bbe   : > { %p4527_p9 = scmp.ge.s32.totalorder %s3871_s21, 2  ;;  %s3008_s15 = scalar_lea.sflag [#allocation4], %s3007_s6 }
0x1bc0   : > { %p3557_p1 = pnand %p4527_p9, %p4526_p5 }
0x1bc2   : > { %3854 = dma.done.wait (!%p3557_p1), %s3008_s15, 128  }
0x1bc3   : > { %3856 = vsyncadd (!%p3557_p1), %s3008_s15, 4294967168  ;;  %p22_p2 = scmp.ge.s32.totalorder %s4041_s14, 4   ;;  %s4528_s18 = smov %s3863_s19 }
0x1bc4   : > { %s4529_s19 = smov %s3867_s20  ;;  %s4530_s20 = smov %s4051_s23 }
0x1bc5   : > { %s4531_s21 = smov %s4041_s14  ;;  %24 = sbr.rel (!%p22_p2) target bundleno = 11 (0xb), region = 119 }
0x1bcc   :  { %3013 = vsyncpa [#allocation3], 1 }
0x1bcd   :  { %3015 = vsyncpa [#allocation3 + $0x1], 1 }
0x1bce   :  { %3016 = vsyncpa [#allocation6], 1 }
0x1bcf   :  { %3018 = vsyncpa [#allocation6 + $0x1], 1 }
0x1bd0   :  { %3019 = vsyncpa [#allocation9], 1 }
0x1bd1   :  { %3020 = vsyncpa [#allocation4], 1 }
0x1bd2   :  { %3022 = vsyncpa [#allocation4 + $0x1], 1 }

</bundles_post_ra>
